<compile_context>
chip_gen: v7x
topology: tpu7x:2x2x1
jax: 0.10.0
libtpu: 0.0.40
codegen_flags: <defaults>
</compile_context>

<pallas_src>
import math

import jax
import jax.numpy as jnp
from jax.experimental import pallas as pl
from jax.experimental.pallas import tpu as pltpu

# --- small synthetic "scibert-like" config ---------------------------------
B, S, H, F, NH, NL = 2, 8, 32, 64, 4, 2      # batch, seq, hidden, ffn, heads, layers
HD = H // NH
BS = B * S                                   # batch folded into rows
HP, FP = 128, 128                            # lane-padded hidden / ffn dims
VOCAB, MAXPOS, NTYPES = 100, 64, 2
EPS = 1e-12


# --- in-kernel helpers -------------------------------------------------------
def _layernorm(x, gamma, beta):
    # x: (rows, HP) f32 with real data in lanes [0, H) and exact zeros elsewhere.
    # Padded lanes contribute 0 to sum(x) and sum(x*x), so the real-lane mean and
    # variance are just 1/H-scaled lane sums (no mask multiply needed).
    mu = jnp.sum(x, axis=-1, keepdims=True) * (1.0 / H)
    var = jnp.maximum(jnp.sum(x * x, axis=-1, keepdims=True) * (1.0 / H) - mu * mu, 0.0)
    # gamma/beta are zero-padded, so padded lanes of the result stay exactly zero.
    return (x - mu) * jax.lax.rsqrt(var + EPS) * gamma + beta


def _gelu(x):
    # tanh-approximate GELU (EUP handles tanh).
    c = math.sqrt(2.0 / math.pi)
    return 0.5 * x * (1.0 + jnp.tanh(c * (x + 0.044715 * x * x * x)))


# --- fused Pallas kernel -----------------------------------------------------
def fused_encoder_kernel(emb_ref, bias_ref, eg_ref, eb_ref,
                         wqkv_ref, bqkv_ref, wo_ref, bo_ref, g1_ref, be1_ref,
                         w1_ref, b1_ref, w2_ref, b2_ref, g2_ref, be2_ref,
                         pw_ref, pb_ref, o_ref):
    x = _layernorm(emb_ref[...], eg_ref[...], eb_ref[...])      # (BS, HP) f32
    bias = bias_ref[...]                                        # (NH*BS, BS) additive mask

    # Per-head lane masks in f32, hoisted out of the layer loop (built once).
    lane = jax.lax.broadcasted_iota(jnp.int32, (1, HP), 1)
    masks = [((lane >= h * HD) & (lane < (h + 1) * HD)).astype(jnp.float32)
             for h in range(NH)]

    for l in range(NL):                                         # static unrolled layer loop
        xb = x.astype(jnp.bfloat16)
        # Single merged QKV matmul over all B*S rows; 1/sqrt(HD) folded into Q columns.
        qkv = jnp.dot(xb, wqkv_ref[l], preferred_element_type=jnp.float32) + bqkv_ref[l]
        q = qkv[:, 0 * HP:1 * HP]                               # (BS, HP) f32
        kx = qkv[:, 1 * HP:2 * HP]
        vx = qkv[:, 2 * HP:3 * HP]

        # --- head-stacked attention: 2 matmuls + 1 softmax for ALL heads ---
        # Mask q per head in f32, stack heads along the row axis, cast once.
        q_stack = jnp.concatenate([q * masks[h] for h in range(NH)],
                                  axis=0).astype(jnp.bfloat16)  # (NH*BS, HP)
        kb = kx.astype(jnp.bfloat16)                            # (BS, HP)
        vb = vx.astype(jnp.bfloat16)                            # (BS, HP)

        # Scores for every head / batch at once; bias carries padding + cross-batch -1e9.
        s = jax.lax.dot_general(q_stack, kb, (((1,), (1,)), ((), ())),
                                preferred_element_type=jnp.float32) + bias     # (NH*BS, BS)
        s = s - jnp.max(s, axis=-1, keepdims=True)
        p = jnp.exp(s)
        p = p * pl.reciprocal(jnp.sum(p, axis=-1, keepdims=True), approx=True)
        ctx_stack = jnp.dot(p.astype(jnp.bfloat16), vb,
                            preferred_element_type=jnp.float32)                # (NH*BS, HP)

        # Select each head's lanes on its row block and sum (lanes are disjoint).
        ctx = jnp.zeros((BS, HP), jnp.float32)
        for h in range(NH):
            ctx = ctx + ctx_stack[h * BS:(h + 1) * BS, :] * masks[h]

        attn = jnp.dot(ctx.astype(jnp.bfloat16), wo_ref[l],
                       preferred_element_type=jnp.float32) + bo_ref[l]
        h1 = _layernorm(x + attn, g1_ref[l], be1_ref[l])

        ff = _gelu(jnp.dot(h1.astype(jnp.bfloat16), w1_ref[l],
                           preferred_element_type=jnp.float32) + b1_ref[l])
        ff = jnp.dot(ff.astype(jnp.bfloat16), w2_ref[l],
                     preferred_element_type=jnp.float32) + b2_ref[l]
        x = _layernorm(h1 + ff, g2_ref[l], be2_ref[l])

    # BERT pooler: gather all CLS rows (row b*S for each batch) into one (B, HP)
    # tile and do a single matmul + tanh.  Lane-dense (HP=128) output store.
    cls = jnp.concatenate([x[b * S:b * S + 1, :] for b in range(B)],
                          axis=0).astype(jnp.bfloat16)          # (B, HP)
    o_ref[...] = jnp.tanh(jnp.dot(cls, pw_ref[...],
                                  preferred_element_type=jnp.float32) + pb_ref[...])


def fused_forward_call(emb, bias, kp):
    c2 = lambda i: (0, 0)
    c3 = lambda i: (0, 0, 0)
    in_specs = [
        pl.BlockSpec((BS, HP), c2),                              # padded embeddings (batch folded)
        pl.BlockSpec((NH * BS, BS), c2),                         # additive attention bias
        pl.BlockSpec((1, HP), c2), pl.BlockSpec((1, HP), c2),                   # emb LN
        pl.BlockSpec((NL, HP, 3 * HP), c3), pl.BlockSpec((NL, 1, 3 * HP), c3),  # QKV
        pl.BlockSpec((NL, HP, HP), c3), pl.BlockSpec((NL, 1, HP), c3),          # out proj
        pl.BlockSpec((NL, 1, HP), c3), pl.BlockSpec((NL, 1, HP), c3),           # LN1
        pl.BlockSpec((NL, HP, FP), c3), pl.BlockSpec((NL, 1, FP), c3),          # FFN w1
        pl.BlockSpec((NL, FP, HP), c3), pl.BlockSpec((NL, 1, HP), c3),          # FFN w2
        pl.BlockSpec((NL, 1, HP), c3), pl.BlockSpec((NL, 1, HP), c3),           # LN2
        pl.BlockSpec((HP, HP), c2), pl.BlockSpec((1, HP), c2),                  # pooler
    ]
    return pl.pallas_call(
        fused_encoder_kernel,
        out_shape=jax.ShapeDtypeStruct((B, HP), jnp.float32),
        grid=(1,),                                               # batch folded into rows
        in_specs=in_specs,
        out_specs=pl.BlockSpec((B, HP), c2),
        compiler_params=pltpu.CompilerParams(dimension_semantics=("arbitrary",)),
    )(emb, bias,
      kp["emb_ln_g"], kp["emb_ln_b"],
      kp["wqkv"], kp["bqkv"], kp["wo"], kp["bo"], kp["ln1_g"], kp["ln1_b"],
      kp["w1"], kp["b1"], kp["w2"], kp["b2"], kp["ln2_g"], kp["ln2_b"],
      kp["pool_w"], kp["pool_b"])


# --- parameters (deterministic synthetic init; no checkpoint load) -----------
def init_params(key):
    def nrm(k, shape, scale=0.02):
        return (scale * jax.random.normal(k, shape)).astype(jnp.float32)

    keys = iter(jax.random.split(key, 8 + NL * 8))
    params = {
        "word_emb": nrm(next(keys), (VOCAB, H)),
        "pos_emb": nrm(next(keys), (MAXPOS, H)),
        "type_emb": nrm(next(keys), (NTYPES, H)),
        "emb_ln_g": jnp.ones((1, H), jnp.float32),
        "emb_ln_b": jnp.zeros((1, H), jnp.float32),
        "pool_w": nrm(next(keys), (H, H)),
        "pool_b": jnp.zeros((1, H), jnp.float32),
        "layers": [],
    }
    for _ in range(NL):
        lp = {
            "wq": nrm(next(keys), (H, H)), "bq": jnp.zeros((1, H), jnp.float32),
            "wk": nrm(next(keys), (H, H)), "bk": jnp.zeros((1, H), jnp.float32),
            "wv": nrm(next(keys), (H, H)), "bv": jnp.zeros((1, H), jnp.float32),
            "wo": nrm(next(keys), (H, H)), "bo": jnp.zeros((1, H), jnp.float32),
            "ln1_g": jnp.ones((1, H), jnp.float32), "ln1_b": jnp.zeros((1, H), jnp.float32),
            "w1": nrm(next(keys), (H, F)), "b1": jnp.zeros((1, F), jnp.float32),
            "w2": nrm(next(keys), (F, H)), "b2": jnp.zeros((1, H), jnp.float32),
            "ln2_g": jnp.ones((1, H), jnp.float32), "ln2_b": jnp.zeros((1, H), jnp.float32),
        }
        params["layers"].append(lp)
    return params


def prepare_kernel_params(p):
    """Pad lane dims to 128, merge QKV, fold 1/sqrt(HD), stack layers, cast to bf16."""
    def padw(w, r, c):
        z = jnp.zeros((r, c), jnp.float32)
        return z.at[:w.shape[0], :w.shape[1]].set(w)

    scale = 1.0 / math.sqrt(HD)
    stacks = {k: [] for k in ("wqkv", "bqkv", "wo", "bo", "ln1_g", "ln1_b",
                              "w1", "b1", "w2", "b2", "ln2_g", "ln2_b")}
    for lp in p["layers"]:
        stacks["wqkv"].append(jnp.concatenate(
            [padw(lp["wq"] * scale, HP, HP), padw(lp["wk"], HP, HP), padw(lp["wv"], HP, HP)],
            axis=1))
        stacks["bqkv"].append(jnp.concatenate(
            [padw(lp["bq"] * scale, 1, HP), padw(lp["bk"], 1, HP), padw(lp["bv"], 1, HP)],
            axis=1))
        stacks["wo"].append(padw(lp["wo"], HP, HP)); stacks["bo"].append(padw(lp["bo"], 1, HP))
        stacks["ln1_g"].append(padw(lp["ln1_g"], 1, HP)); stacks["ln1_b"].append(padw(lp["ln1_b"], 1, HP))
        stacks["w1"].append(padw(lp["w1"], HP, FP)); stacks["b1"].append(padw(lp["b1"], 1, FP))
        stacks["w2"].append(padw(lp["w2"], FP, HP)); stacks["b2"].append(padw(lp["b2"], 1, HP))
        stacks["ln2_g"].append(padw(lp["ln2_g"], 1, HP)); stacks["ln2_b"].append(padw(lp["ln2_b"], 1, HP))

    kp = {k: jnp.stack(v) for k, v in stacks.items()}
    for k in ("wqkv", "wo", "w1", "w2"):
        kp[k] = kp[k].astype(jnp.bfloat16)           # MXU-native matmul operands
    kp.update({
        "word_emb": padw(p["word_emb"], VOCAB, HP),
        "pos_emb": padw(p["pos_emb"], MAXPOS, HP),
        "type_emb": padw(p["type_emb"], NTYPES, HP),
        "emb_ln_g": padw(p["emb_ln_g"], 1, HP),
        "emb_ln_b": padw(p["emb_ln_b"], 1, HP),
        "pool_w": padw(p["pool_w"], HP, HP).astype(jnp.bfloat16),
        "pool_b": padw(p["pool_b"], 1, HP),
    })
    return kp


def build_attn_bias(attention_mask):
    """(NH*B*S, B*S) additive bias: padding mask + cross-batch block mask."""
    m = attention_mask.astype(jnp.float32)                       # (B, S)
    key_bias = ((1.0 - m) * -1e9).reshape(1, BS)                 # padded keys
    batch_id = jnp.arange(BS) // S
    cross = jnp.where(batch_id[:, None] == batch_id[None, :], 0.0, -1e9)  # (BS, BS)
    bias = cross + key_bias                                      # (BS, BS)
    return jnp.tile(bias, (NH, 1))                               # (NH*BS, BS), same for all heads


# --- full forward: TextEncoder.forward(input_ids, attention_mask) ------------
def text_encoder_forward(kp, input_ids, attention_mask):
    # Embedding gathers (plain-JAX glue); tables are already lane-padded to HP.
    pos_ids = jnp.arange(S)
    emb = (jnp.take(kp["word_emb"], input_ids, axis=0)
           + kp["pos_emb"][pos_ids][None, :, :]
           + kp["type_emb"][0][None, None, :])                   # (B, S, HP)
    emb = emb.reshape(BS, HP)                                    # batch folded into rows
    bias = build_attn_bias(attention_mask)                       # (NH*BS, BS)

    pooled = fused_forward_call(emb, bias, kp)                   # (B, HP)
    # self.dropout(...) is identity in eval mode; returned unchanged.
    return pooled[:, :H]                                         # (B, H) pooler_output


# --- pure-JAX reference (f32, unpadded) for a sanity check --------------------
def reference_forward(params, input_ids, attention_mask):
    def ln(x, g, b):
        mu = jnp.mean(x, -1, keepdims=True)
        var = jnp.mean((x - mu) ** 2, -1, keepdims=True)
        return (x - mu) / jnp.sqrt(var + EPS) * g + b

    pos_ids = jnp.arange(S)
    x = (jnp.take(params["word_emb"], input_ids, axis=0)
         + params["pos_emb"][pos_ids][None] + params["type_emb"][0][None, None, :])
    x = ln(x, params["emb_ln_g"], params["emb_ln_b"])
    bias = ((1.0 - attention_mask.astype(jnp.float32)) * -1e9)[:, None, None, :]
    for lp in params["layers"]:
        q = x @ lp["wq"] + lp["bq"]; k = x @ lp["wk"] + lp["bk"]; v = x @ lp["wv"] + lp["bv"]
        split = lambda t: t.reshape(B, S, NH, HD).transpose(0, 2, 1, 3)
        s = jnp.einsum("bhqd,bhkd->bhqk", split(q), split(k)) / math.sqrt(HD) + bias
        p = jax.nn.softmax(s, axis=-1)
        ctx = jnp.einsum("bhqk,bhkd->bhqd", p, split(v)).transpose(0, 2, 1, 3).reshape(B, S, H)
        h1 = ln(x + ctx @ lp["wo"] + lp["bo"], lp["ln1_g"], lp["ln1_b"])
        ff = _gelu(h1 @ lp["w1"] + lp["b1"]) @ lp["w2"] + lp["b2"]
        x = ln(h1 + ff, lp["ln2_g"], lp["ln2_b"])
    return jnp.tanh(x[:, 0, :] @ params["pool_w"] + params["pool_b"])


if __name__ == "__main__":
    key = jax.random.PRNGKey(0)
    pkey, ikey = jax.random.split(key)
    params = init_params(pkey)
    kparams = prepare_kernel_params(params)

    input_ids = jax.random.randint(ikey, (B, S), 0, VOCAB, dtype=jnp.int32)
    attention_mask = jnp.ones((B, S), dtype=jnp.int32).at[1, S - 1].set(0)  # one padded token

    fwd = jax.jit(text_encoder_forward)
    out = fwd(kparams, input_ids, attention_mask)
    jax.block_until_ready(out)

    assert out.shape == (B, H) and out.dtype == jnp.float32
    assert bool(jnp.all(jnp.isfinite(out)))

    ref = reference_forward(params, input_ids, attention_mask)
    max_err = float(jnp.max(jnp.abs(out - ref)))
    assert max_err < 2e-2, f"mismatch vs reference: {max_err}"
    print("KERNEL_OK")
</pallas_src>

<mosaic_0001>
module attributes {stable_mosaic.version = 11 : i64} {
  func.func @fused_encoder_kernel(%arg0: i32, %arg1: memref<16x128xf32, #tpu.memory_space<vmem>>, %arg2: memref<64x16xf32, #tpu.memory_space<vmem>>, %arg3: memref<1x128xf32, #tpu.memory_space<vmem>>, %arg4: memref<1x128xf32, #tpu.memory_space<vmem>>, %arg5: memref<2x128x384xbf16, #tpu.memory_space<vmem>>, %arg6: memref<2x1x384xf32, #tpu.memory_space<vmem>>, %arg7: memref<2x128x128xbf16, #tpu.memory_space<vmem>>, %arg8: memref<2x1x128xf32, #tpu.memory_space<vmem>>, %arg9: memref<2x1x128xf32, #tpu.memory_space<vmem>>, %arg10: memref<2x1x128xf32, #tpu.memory_space<vmem>>, %arg11: memref<2x128x128xbf16, #tpu.memory_space<vmem>>, %arg12: memref<2x1x128xf32, #tpu.memory_space<vmem>>, %arg13: memref<2x128x128xbf16, #tpu.memory_space<vmem>>, %arg14: memref<2x1x128xf32, #tpu.memory_space<vmem>>, %arg15: memref<2x1x128xf32, #tpu.memory_space<vmem>>, %arg16: memref<2x1x128xf32, #tpu.memory_space<vmem>>, %arg17: memref<128x128xbf16, #tpu.memory_space<vmem>>, %arg18: memref<1x128xf32, #tpu.memory_space<vmem>>, %arg19: memref<2x128xf32, #tpu.memory_space<vmem>>) attributes {dimension_semantics = [#tpu.dimension_semantics<arbitrary>], iteration_bounds = array<i64: 1>, scalar_prefetch = 0 : i64, scratch_operands = 0 : i64, tpu.core_type = #tpu.core_type<tc>, window_params = [{pipeline_mode = #tpu.pipeline_mode<synchronous>, transform_indices = @transform_0, window_bounds = array<i64: 16, 128>}, {pipeline_mode = #tpu.pipeline_mode<synchronous>, transform_indices = @transform_1, window_bounds = array<i64: 64, 16>}, {pipeline_mode = #tpu.pipeline_mode<synchronous>, transform_indices = @transform_2, window_bounds = array<i64: 1, 128>}, {pipeline_mode = #tpu.pipeline_mode<synchronous>, transform_indices = @transform_3, window_bounds = array<i64: 1, 128>}, {pipeline_mode = #tpu.pipeline_mode<synchronous>, transform_indices = @transform_4, window_bounds = array<i64: 2, 128, 384>}, {pipeline_mode = #tpu.pipeline_mode<synchronous>, transform_indices = @transform_5, window_bounds = array<i64: 2, 1, 384>}, {pipeline_mode = #tpu.pipeline_mode<synchronous>, transform_indices = @transform_6, window_bounds = array<i64: 2, 128, 128>}, {pipeline_mode = #tpu.pipeline_mode<synchronous>, transform_indices = @transform_7, window_bounds = array<i64: 2, 1, 128>}, {pipeline_mode = #tpu.pipeline_mode<synchronous>, transform_indices = @transform_8, window_bounds = array<i64: 2, 1, 128>}, {pipeline_mode = #tpu.pipeline_mode<synchronous>, transform_indices = @transform_9, window_bounds = array<i64: 2, 1, 128>}, {pipeline_mode = #tpu.pipeline_mode<synchronous>, transform_indices = @transform_10, window_bounds = array<i64: 2, 128, 128>}, {pipeline_mode = #tpu.pipeline_mode<synchronous>, transform_indices = @transform_11, window_bounds = array<i64: 2, 1, 128>}, {pipeline_mode = #tpu.pipeline_mode<synchronous>, transform_indices = @transform_12, window_bounds = array<i64: 2, 128, 128>}, {pipeline_mode = #tpu.pipeline_mode<synchronous>, transform_indices = @transform_13, window_bounds = array<i64: 2, 1, 128>}, {pipeline_mode = #tpu.pipeline_mode<synchronous>, transform_indices = @transform_14, window_bounds = array<i64: 2, 1, 128>}, {pipeline_mode = #tpu.pipeline_mode<synchronous>, transform_indices = @transform_15, window_bounds = array<i64: 2, 1, 128>}, {pipeline_mode = #tpu.pipeline_mode<synchronous>, transform_indices = @transform_16, window_bounds = array<i64: 128, 128>}, {pipeline_mode = #tpu.pipeline_mode<synchronous>, transform_indices = @transform_17, window_bounds = array<i64: 1, 128>}, {pipeline_mode = #tpu.pipeline_mode<synchronous>, transform_indices = @transform_18, window_bounds = array<i64: 2, 128>}]} {
    %c0 = arith.constant 0 : index
    %c0_0 = arith.constant 0 : index
    %0 = vector.load %arg1[%c0, %c0_0] : memref<16x128xf32, #tpu.memory_space<vmem>>, vector<16x128xf32>
    %c0_1 = arith.constant 0 : index
    %c0_2 = arith.constant 0 : index
    %1 = vector.load %arg3[%c0_1, %c0_2] : memref<1x128xf32, #tpu.memory_space<vmem>>, vector<1x128xf32>
    %c0_3 = arith.constant 0 : index
    %c0_4 = arith.constant 0 : index
    %2 = vector.load %arg4[%c0_3, %c0_4] : memref<1x128xf32, #tpu.memory_space<vmem>>, vector<1x128xf32>
    %cst = arith.constant dense<0.000000e+00> : vector<16xf32>
    %3 = vector.multi_reduction <add>, %0, %cst [1] : vector<16x128xf32> to vector<16xf32>
    %4 = vector.shape_cast %3 : vector<16xf32> to vector<16x1xf32>
    %cst_5 = arith.constant 3.125000e-02 : f32
    %5 = vector.broadcast %cst_5 : f32 to vector<16x1xf32>
    %6 = arith.mulf %4, %5 : vector<16x1xf32>
    %7 = arith.mulf %0, %0 : vector<16x128xf32>
    %cst_6 = arith.constant dense<0.000000e+00> : vector<16xf32>
    %8 = vector.multi_reduction <add>, %7, %cst_6 [1] : vector<16x128xf32> to vector<16xf32>
    %9 = vector.shape_cast %8 : vector<16xf32> to vector<16x1xf32>
    %cst_7 = arith.constant 3.125000e-02 : f32
    %10 = vector.broadcast %cst_7 : f32 to vector<16x1xf32>
    %11 = arith.mulf %9, %10 : vector<16x1xf32>
    %12 = arith.mulf %6, %6 : vector<16x1xf32>
    %13 = arith.subf %11, %12 : vector<16x1xf32>
    %cst_8 = arith.constant 0.000000e+00 : f32
    %14 = vector.broadcast %cst_8 : f32 to vector<16x1xf32>
    %15 = arith.maximumf %13, %14 : vector<16x1xf32>
    %16 = vector.broadcast %6 : vector<16x1xf32> to vector<16x128xf32>
    %17 = arith.subf %0, %16 : vector<16x128xf32>
    %cst_9 = arith.constant 9.99999996E-13 : f32
    %18 = vector.broadcast %cst_9 : f32 to vector<16x1xf32>
    %19 = arith.addf %15, %18 : vector<16x1xf32>
    %20 = math.rsqrt %19 : vector<16x1xf32>
    %21 = vector.broadcast %20 : vector<16x1xf32> to vector<16x128xf32>
    %22 = arith.mulf %17, %21 : vector<16x128xf32>
    %23 = vector.broadcast %1 : vector<1x128xf32> to vector<16x128xf32>
    %24 = arith.mulf %22, %23 : vector<16x128xf32>
    %25 = vector.broadcast %2 : vector<1x128xf32> to vector<16x128xf32>
    %26 = arith.addf %24, %25 : vector<16x128xf32>
    %c0_10 = arith.constant 0 : index
    %c0_11 = arith.constant 0 : index
    %27 = vector.load %arg2[%c0_10, %c0_11] : memref<64x16xf32, #tpu.memory_space<vmem>>, vector<64x16xf32>
    %28 = tpu.iota {dimensions = array<i32: 1>} : vector<1x128xi32>
    %c0_i32 = arith.constant 0 : i32
    %29 = vector.broadcast %c0_i32 : i32 to vector<1x128xi32>
    %30 = arith.cmpi sge, %28, %29 : vector<1x128xi32>
    %c8_i32 = arith.constant 8 : i32
    %31 = vector.broadcast %c8_i32 : i32 to vector<1x128xi32>
    %32 = arith.cmpi slt, %28, %31 : vector<1x128xi32>
    %33 = arith.andi %30, %32 : vector<1x128xi1>
    %34 = arith.extui %33 : vector<1x128xi1> to vector<1x128xi32>
    %35 = arith.sitofp %34 : vector<1x128xi32> to vector<1x128xf32>
    %c8_i32_12 = arith.constant 8 : i32
    %36 = vector.broadcast %c8_i32_12 : i32 to vector<1x128xi32>
    %37 = arith.cmpi sge, %28, %36 : vector<1x128xi32>
    %c16_i32 = arith.constant 16 : i32
    %38 = vector.broadcast %c16_i32 : i32 to vector<1x128xi32>
    %39 = arith.cmpi slt, %28, %38 : vector<1x128xi32>
    %40 = arith.andi %37, %39 : vector<1x128xi1>
    %41 = arith.extui %40 : vector<1x128xi1> to vector<1x128xi32>
    %42 = arith.sitofp %41 : vector<1x128xi32> to vector<1x128xf32>
    %c16_i32_13 = arith.constant 16 : i32
    %43 = vector.broadcast %c16_i32_13 : i32 to vector<1x128xi32>
    %44 = arith.cmpi sge, %28, %43 : vector<1x128xi32>
    %c24_i32 = arith.constant 24 : i32
    %45 = vector.broadcast %c24_i32 : i32 to vector<1x128xi32>
    %46 = arith.cmpi slt, %28, %45 : vector<1x128xi32>
    %47 = arith.andi %44, %46 : vector<1x128xi1>
    %48 = arith.extui %47 : vector<1x128xi1> to vector<1x128xi32>
    %49 = arith.sitofp %48 : vector<1x128xi32> to vector<1x128xf32>
    %c24_i32_14 = arith.constant 24 : i32
    %50 = vector.broadcast %c24_i32_14 : i32 to vector<1x128xi32>
    %51 = arith.cmpi sge, %28, %50 : vector<1x128xi32>
    %c32_i32 = arith.constant 32 : i32
    %52 = vector.broadcast %c32_i32 : i32 to vector<1x128xi32>
    %53 = arith.cmpi slt, %28, %52 : vector<1x128xi32>
    %54 = arith.andi %51, %53 : vector<1x128xi1>
    %55 = arith.extui %54 : vector<1x128xi1> to vector<1x128xi32>
    %56 = arith.sitofp %55 : vector<1x128xi32> to vector<1x128xf32>
    %57 = arith.truncf %26 : vector<16x128xf32> to vector<16x128xbf16>
    %c0_15 = arith.constant 0 : index
    %c0_16 = arith.constant 0 : index
    %c0_17 = arith.constant 0 : index
    %58 = vector.load %arg5[%c0_15, %c0_16, %c0_17] : memref<2x128x384xbf16, #tpu.memory_space<vmem>>, vector<1x128x384xbf16>
    %59 = vector.shape_cast %58 : vector<1x128x384xbf16> to vector<128x384xbf16>
    %cst_18 = arith.constant dense<0.000000e+00> : vector<16x384xf32>
    %60 = tpu.matmul %57, %59, %cst_18 {dimension_numbers = #tpu.dot_dimension_numbers<[1], [0], [0], [1], [0, 0, 1, 1], [], []>} : vector<16x128xbf16>, vector<128x384xbf16>, vector<16x384xf32> -> vector<16x384xf32>
    %c0_19 = arith.constant 0 : index
    %c0_20 = arith.constant 0 : index
    %c0_21 = arith.constant 0 : index
    %61 = vector.load %arg6[%c0_19, %c0_20, %c0_21] : memref<2x1x384xf32, #tpu.memory_space<vmem>>, vector<1x1x384xf32>
    %62 = vector.shape_cast %61 : vector<1x1x384xf32> to vector<1x384xf32>
    %63 = vector.broadcast %62 : vector<1x384xf32> to vector<16x384xf32>
    %64 = arith.addf %60, %63 : vector<16x384xf32>
    %65 = vector.extract_strided_slice %64 {offsets = [0, 0], sizes = [16, 128], strides = [1, 1]} : vector<16x384xf32> to vector<16x128xf32>
    %66 = vector.extract_strided_slice %64 {offsets = [0, 128], sizes = [16, 128], strides = [1, 1]} : vector<16x384xf32> to vector<16x128xf32>
    %67 = vector.extract_strided_slice %64 {offsets = [0, 256], sizes = [16, 128], strides = [1, 1]} : vector<16x384xf32> to vector<16x128xf32>
    %68 = vector.broadcast %35 : vector<1x128xf32> to vector<16x128xf32>
    %69 = arith.mulf %65, %68 : vector<16x128xf32>
    %70 = vector.broadcast %42 : vector<1x128xf32> to vector<16x128xf32>
    %71 = arith.mulf %65, %70 : vector<16x128xf32>
    %72 = vector.broadcast %49 : vector<1x128xf32> to vector<16x128xf32>
    %73 = arith.mulf %65, %72 : vector<16x128xf32>
    %74 = vector.broadcast %56 : vector<1x128xf32> to vector<16x128xf32>
    %75 = arith.mulf %65, %74 : vector<16x128xf32>
    %76 = tpu.concatenate %69, %71, %73, %75 in 0 : vector<16x128xf32>, vector<16x128xf32>, vector<16x128xf32>, vector<16x128xf32> -> vector<64x128xf32>
    %77 = arith.truncf %76 : vector<64x128xf32> to vector<64x128xbf16>
    %78 = arith.truncf %66 : vector<16x128xf32> to vector<16x128xbf16>
    %79 = arith.truncf %67 : vector<16x128xf32> to vector<16x128xbf16>
    %cst_22 = arith.constant dense<0.000000e+00> : vector<64x16xf32>
    %80 = tpu.matmul %77, %78, %cst_22 {dimension_numbers = #tpu.dot_dimension_numbers<[1], [1], [0], [0], [0, 0, 1, 0], [], []>} : vector<64x128xbf16>, vector<16x128xbf16>, vector<64x16xf32> -> vector<64x16xf32>
    %81 = arith.addf %80, %27 : vector<64x16xf32>
    %cst_23 = arith.constant dense<0xFF800000> : vector<64xf32>
    %82 = vector.multi_reduction <maximumf>, %81, %cst_23 [1] : vector<64x16xf32> to vector<64xf32>
    %83 = vector.shape_cast %82 : vector<64xf32> to vector<64x1xf32>
    %84 = vector.broadcast %83 : vector<64x1xf32> to vector<64x16xf32>
    %85 = arith.subf %81, %84 : vector<64x16xf32>
    %86 = math.exp %85 : vector<64x16xf32>
    %cst_24 = arith.constant dense<0.000000e+00> : vector<64xf32>
    %87 = vector.multi_reduction <add>, %86, %cst_24 [1] : vector<64x16xf32> to vector<64xf32>
    %88 = vector.shape_cast %87 : vector<64xf32> to vector<64x1xf32>
    %89 = tpu.reciprocal %88 {approx = true} : vector<64x1xf32> -> vector<64x1xf32>
    %90 = vector.broadcast %89 : vector<64x1xf32> to vector<64x16xf32>
    %91 = arith.mulf %86, %90 : vector<64x16xf32>
    %92 = arith.truncf %91 : vector<64x16xf32> to vector<64x16xbf16>
    %cst_25 = arith.constant dense<0.000000e+00> : vector<64x128xf32>
    %93 = tpu.matmul %92, %79, %cst_25 {dimension_numbers = #tpu.dot_dimension_numbers<[1], [0], [0], [1], [0, 0, 1, 1], [], []>} : vector<64x16xbf16>, vector<16x128xbf16>, vector<64x128xf32> -> vector<64x128xf32>
    %cst_26 = arith.constant 0.000000e+00 : f32
    %94 = vector.broadcast %cst_26 : f32 to vector<16x128xf32>
    %95 = vector.extract_strided_slice %93 {offsets = [0, 0], sizes = [16, 128], strides = [1, 1]} : vector<64x128xf32> to vector<16x128xf32>
    %96 = vector.broadcast %35 : vector<1x128xf32> to vector<16x128xf32>
    %97 = arith.mulf %95, %96 : vector<16x128xf32>
    %98 = arith.addf %94, %97 : vector<16x128xf32>
    %99 = vector.extract_strided_slice %93 {offsets = [16, 0], sizes = [16, 128], strides = [1, 1]} : vector<64x128xf32> to vector<16x128xf32>
    %100 = vector.broadcast %42 : vector<1x128xf32> to vector<16x128xf32>
    %101 = arith.mulf %99, %100 : vector<16x128xf32>
    %102 = arith.addf %98, %101 : vector<16x128xf32>
    %103 = vector.extract_strided_slice %93 {offsets = [32, 0], sizes = [16, 128], strides = [1, 1]} : vector<64x128xf32> to vector<16x128xf32>
    %104 = vector.broadcast %49 : vector<1x128xf32> to vector<16x128xf32>
    %105 = arith.mulf %103, %104 : vector<16x128xf32>
    %106 = arith.addf %102, %105 : vector<16x128xf32>
    %107 = vector.extract_strided_slice %93 {offsets = [48, 0], sizes = [16, 128], strides = [1, 1]} : vector<64x128xf32> to vector<16x128xf32>
    %108 = vector.broadcast %56 : vector<1x128xf32> to vector<16x128xf32>
    %109 = arith.mulf %107, %108 : vector<16x128xf32>
    %110 = arith.addf %106, %109 : vector<16x128xf32>
    %111 = arith.truncf %110 : vector<16x128xf32> to vector<16x128xbf16>
    %c0_27 = arith.constant 0 : index
    %c0_28 = arith.constant 0 : index
    %c0_29 = arith.constant 0 : index
    %112 = vector.load %arg7[%c0_27, %c0_28, %c0_29] : memref<2x128x128xbf16, #tpu.memory_space<vmem>>, vector<1x128x128xbf16>
    %113 = vector.shape_cast %112 : vector<1x128x128xbf16> to vector<128x128xbf16>
    %cst_30 = arith.constant dense<0.000000e+00> : vector<16x128xf32>
    %114 = tpu.matmul %111, %113, %cst_30 {dimension_numbers = #tpu.dot_dimension_numbers<[1], [0], [0], [1], [0, 0, 1, 1], [], []>} : vector<16x128xbf16>, vector<128x128xbf16>, vector<16x128xf32> -> vector<16x128xf32>
    %c0_31 = arith.constant 0 : index
    %c0_32 = arith.constant 0 : index
    %c0_33 = arith.constant 0 : index
    %115 = vector.load %arg8[%c0_31, %c0_32, %c0_33] : memref<2x1x128xf32, #tpu.memory_space<vmem>>, vector<1x1x128xf32>
    %116 = vector.shape_cast %115 : vector<1x1x128xf32> to vector<1x128xf32>
    %117 = vector.broadcast %116 : vector<1x128xf32> to vector<16x128xf32>
    %118 = arith.addf %114, %117 : vector<16x128xf32>
    %119 = arith.addf %26, %118 : vector<16x128xf32>
    %c0_34 = arith.constant 0 : index
    %c0_35 = arith.constant 0 : index
    %c0_36 = arith.constant 0 : index
    %120 = vector.load %arg9[%c0_34, %c0_35, %c0_36] : memref<2x1x128xf32, #tpu.memory_space<vmem>>, vector<1x1x128xf32>
    %121 = vector.shape_cast %120 : vector<1x1x128xf32> to vector<1x128xf32>
    %c0_37 = arith.constant 0 : index
    %c0_38 = arith.constant 0 : index
    %c0_39 = arith.constant 0 : index
    %122 = vector.load %arg10[%c0_37, %c0_38, %c0_39] : memref<2x1x128xf32, #tpu.memory_space<vmem>>, vector<1x1x128xf32>
    %123 = vector.shape_cast %122 : vector<1x1x128xf32> to vector<1x128xf32>
    %cst_40 = arith.constant dense<0.000000e+00> : vector<16xf32>
    %124 = vector.multi_reduction <add>, %119, %cst_40 [1] : vector<16x128xf32> to vector<16xf32>
    %125 = vector.shape_cast %124 : vector<16xf32> to vector<16x1xf32>
    %cst_41 = arith.constant 3.125000e-02 : f32
    %126 = vector.broadcast %cst_41 : f32 to vector<16x1xf32>
    %127 = arith.mulf %125, %126 : vector<16x1xf32>
    %128 = arith.mulf %119, %119 : vector<16x128xf32>
    %cst_42 = arith.constant dense<0.000000e+00> : vector<16xf32>
    %129 = vector.multi_reduction <add>, %128, %cst_42 [1] : vector<16x128xf32> to vector<16xf32>
    %130 = vector.shape_cast %129 : vector<16xf32> to vector<16x1xf32>
    %cst_43 = arith.constant 3.125000e-02 : f32
    %131 = vector.broadcast %cst_43 : f32 to vector<16x1xf32>
    %132 = arith.mulf %130, %131 : vector<16x1xf32>
    %133 = arith.mulf %127, %127 : vector<16x1xf32>
    %134 = arith.subf %132, %133 : vector<16x1xf32>
    %cst_44 = arith.constant 0.000000e+00 : f32
    %135 = vector.broadcast %cst_44 : f32 to vector<16x1xf32>
    %136 = arith.maximumf %134, %135 : vector<16x1xf32>
    %137 = vector.broadcast %127 : vector<16x1xf32> to vector<16x128xf32>
    %138 = arith.subf %119, %137 : vector<16x128xf32>
    %cst_45 = arith.constant 9.99999996E-13 : f32
    %139 = vector.broadcast %cst_45 : f32 to vector<16x1xf32>
    %140 = arith.addf %136, %139 : vector<16x1xf32>
    %141 = math.rsqrt %140 : vector<16x1xf32>
    %142 = vector.broadcast %141 : vector<16x1xf32> to vector<16x128xf32>
    %143 = arith.mulf %138, %142 : vector<16x128xf32>
    %144 = vector.broadcast %121 : vector<1x128xf32> to vector<16x128xf32>
    %145 = arith.mulf %143, %144 : vector<16x128xf32>
    %146 = vector.broadcast %123 : vector<1x128xf32> to vector<16x128xf32>
    %147 = arith.addf %145, %146 : vector<16x128xf32>
    %148 = arith.truncf %147 : vector<16x128xf32> to vector<16x128xbf16>
    %c0_46 = arith.constant 0 : index
    %c0_47 = arith.constant 0 : index
    %c0_48 = arith.constant 0 : index
    %149 = vector.load %arg11[%c0_46, %c0_47, %c0_48] : memref<2x128x128xbf16, #tpu.memory_space<vmem>>, vector<1x128x128xbf16>
    %150 = vector.shape_cast %149 : vector<1x128x128xbf16> to vector<128x128xbf16>
    %cst_49 = arith.constant dense<0.000000e+00> : vector<16x128xf32>
    %151 = tpu.matmul %148, %150, %cst_49 {dimension_numbers = #tpu.dot_dimension_numbers<[1], [0], [0], [1], [0, 0, 1, 1], [], []>} : vector<16x128xbf16>, vector<128x128xbf16>, vector<16x128xf32> -> vector<16x128xf32>
    %c0_50 = arith.constant 0 : index
    %c0_51 = arith.constant 0 : index
    %c0_52 = arith.constant 0 : index
    %152 = vector.load %arg12[%c0_50, %c0_51, %c0_52] : memref<2x1x128xf32, #tpu.memory_space<vmem>>, vector<1x1x128xf32>
    %153 = vector.shape_cast %152 : vector<1x1x128xf32> to vector<1x128xf32>
    %154 = vector.broadcast %153 : vector<1x128xf32> to vector<16x128xf32>
    %155 = arith.addf %151, %154 : vector<16x128xf32>
    %cst_53 = arith.constant 5.000000e-01 : f32
    %156 = vector.broadcast %cst_53 : f32 to vector<16x128xf32>
    %157 = arith.mulf %156, %155 : vector<16x128xf32>
    %cst_54 = arith.constant 4.471500e-02 : f32
    %158 = vector.broadcast %cst_54 : f32 to vector<16x128xf32>
    %159 = arith.mulf %158, %155 : vector<16x128xf32>
    %160 = arith.mulf %159, %155 : vector<16x128xf32>
    %161 = arith.mulf %160, %155 : vector<16x128xf32>
    %162 = arith.addf %155, %161 : vector<16x128xf32>
    %cst_55 = arith.constant 0.797884583 : f32
    %163 = vector.broadcast %cst_55 : f32 to vector<16x128xf32>
    %164 = arith.mulf %163, %162 : vector<16x128xf32>
    %165 = math.tanh %164 : vector<16x128xf32>
    %cst_56 = arith.constant 1.000000e+00 : f32
    %166 = vector.broadcast %cst_56 : f32 to vector<16x128xf32>
    %167 = arith.addf %166, %165 : vector<16x128xf32>
    %168 = arith.mulf %157, %167 : vector<16x128xf32>
    %169 = arith.truncf %168 : vector<16x128xf32> to vector<16x128xbf16>
    %c0_57 = arith.constant 0 : index
    %c0_58 = arith.constant 0 : index
    %c0_59 = arith.constant 0 : index
    %170 = vector.load %arg13[%c0_57, %c0_58, %c0_59] : memref<2x128x128xbf16, #tpu.memory_space<vmem>>, vector<1x128x128xbf16>
    %171 = vector.shape_cast %170 : vector<1x128x128xbf16> to vector<128x128xbf16>
    %cst_60 = arith.constant dense<0.000000e+00> : vector<16x128xf32>
    %172 = tpu.matmul %169, %171, %cst_60 {dimension_numbers = #tpu.dot_dimension_numbers<[1], [0], [0], [1], [0, 0, 1, 1], [], []>} : vector<16x128xbf16>, vector<128x128xbf16>, vector<16x128xf32> -> vector<16x128xf32>
    %c0_61 = arith.constant 0 : index
    %c0_62 = arith.constant 0 : index
    %c0_63 = arith.constant 0 : index
    %173 = vector.load %arg14[%c0_61, %c0_62, %c0_63] : memref<2x1x128xf32, #tpu.memory_space<vmem>>, vector<1x1x128xf32>
    %174 = vector.shape_cast %173 : vector<1x1x128xf32> to vector<1x128xf32>
    %175 = vector.broadcast %174 : vector<1x128xf32> to vector<16x128xf32>
    %176 = arith.addf %172, %175 : vector<16x128xf32>
    %177 = arith.addf %147, %176 : vector<16x128xf32>
    %c0_64 = arith.constant 0 : index
    %c0_65 = arith.constant 0 : index
    %c0_66 = arith.constant 0 : index
    %178 = vector.load %arg15[%c0_64, %c0_65, %c0_66] : memref<2x1x128xf32, #tpu.memory_space<vmem>>, vector<1x1x128xf32>
    %179 = vector.shape_cast %178 : vector<1x1x128xf32> to vector<1x128xf32>
    %c0_67 = arith.constant 0 : index
    %c0_68 = arith.constant 0 : index
    %c0_69 = arith.constant 0 : index
    %180 = vector.load %arg16[%c0_67, %c0_68, %c0_69] : memref<2x1x128xf32, #tpu.memory_space<vmem>>, vector<1x1x128xf32>
    %181 = vector.shape_cast %180 : vector<1x1x128xf32> to vector<1x128xf32>
    %cst_70 = arith.constant dense<0.000000e+00> : vector<16xf32>
    %182 = vector.multi_reduction <add>, %177, %cst_70 [1] : vector<16x128xf32> to vector<16xf32>
    %183 = vector.shape_cast %182 : vector<16xf32> to vector<16x1xf32>
    %cst_71 = arith.constant 3.125000e-02 : f32
    %184 = vector.broadcast %cst_71 : f32 to vector<16x1xf32>
    %185 = arith.mulf %183, %184 : vector<16x1xf32>
    %186 = arith.mulf %177, %177 : vector<16x128xf32>
    %cst_72 = arith.constant dense<0.000000e+00> : vector<16xf32>
    %187 = vector.multi_reduction <add>, %186, %cst_72 [1] : vector<16x128xf32> to vector<16xf32>
    %188 = vector.shape_cast %187 : vector<16xf32> to vector<16x1xf32>
    %cst_73 = arith.constant 3.125000e-02 : f32
    %189 = vector.broadcast %cst_73 : f32 to vector<16x1xf32>
    %190 = arith.mulf %188, %189 : vector<16x1xf32>
    %191 = arith.mulf %185, %185 : vector<16x1xf32>
    %192 = arith.subf %190, %191 : vector<16x1xf32>
    %cst_74 = arith.constant 0.000000e+00 : f32
    %193 = vector.broadcast %cst_74 : f32 to vector<16x1xf32>
    %194 = arith.maximumf %192, %193 : vector<16x1xf32>
    %195 = vector.broadcast %185 : vector<16x1xf32> to vector<16x128xf32>
    %196 = arith.subf %177, %195 : vector<16x128xf32>
    %cst_75 = arith.constant 9.99999996E-13 : f32
    %197 = vector.broadcast %cst_75 : f32 to vector<16x1xf32>
    %198 = arith.addf %194, %197 : vector<16x1xf32>
    %199 = math.rsqrt %198 : vector<16x1xf32>
    %200 = vector.broadcast %199 : vector<16x1xf32> to vector<16x128xf32>
    %201 = arith.mulf %196, %200 : vector<16x128xf32>
    %202 = vector.broadcast %179 : vector<1x128xf32> to vector<16x128xf32>
    %203 = arith.mulf %201, %202 : vector<16x128xf32>
    %204 = vector.broadcast %181 : vector<1x128xf32> to vector<16x128xf32>
    %205 = arith.addf %203, %204 : vector<16x128xf32>
    %206 = arith.truncf %205 : vector<16x128xf32> to vector<16x128xbf16>
    %c1 = arith.constant 1 : index
    %c0_76 = arith.constant 0 : index
    %c0_77 = arith.constant 0 : index
    %207 = vector.load %arg5[%c1, %c0_76, %c0_77] : memref<2x128x384xbf16, #tpu.memory_space<vmem>>, vector<1x128x384xbf16>
    %208 = vector.shape_cast %207 : vector<1x128x384xbf16> to vector<128x384xbf16>
    %cst_78 = arith.constant dense<0.000000e+00> : vector<16x384xf32>
    %209 = tpu.matmul %206, %208, %cst_78 {dimension_numbers = #tpu.dot_dimension_numbers<[1], [0], [0], [1], [0, 0, 1, 1], [], []>} : vector<16x128xbf16>, vector<128x384xbf16>, vector<16x384xf32> -> vector<16x384xf32>
    %c1_79 = arith.constant 1 : index
    %c0_80 = arith.constant 0 : index
    %c0_81 = arith.constant 0 : index
    %210 = vector.load %arg6[%c1_79, %c0_80, %c0_81] : memref<2x1x384xf32, #tpu.memory_space<vmem>>, vector<1x1x384xf32>
    %211 = vector.shape_cast %210 : vector<1x1x384xf32> to vector<1x384xf32>
    %212 = vector.broadcast %211 : vector<1x384xf32> to vector<16x384xf32>
    %213 = arith.addf %209, %212 : vector<16x384xf32>
    %214 = vector.extract_strided_slice %213 {offsets = [0, 0], sizes = [16, 128], strides = [1, 1]} : vector<16x384xf32> to vector<16x128xf32>
    %215 = vector.extract_strided_slice %213 {offsets = [0, 128], sizes = [16, 128], strides = [1, 1]} : vector<16x384xf32> to vector<16x128xf32>
    %216 = vector.extract_strided_slice %213 {offsets = [0, 256], sizes = [16, 128], strides = [1, 1]} : vector<16x384xf32> to vector<16x128xf32>
    %217 = vector.broadcast %35 : vector<1x128xf32> to vector<16x128xf32>
    %218 = arith.mulf %214, %217 : vector<16x128xf32>
    %219 = vector.broadcast %42 : vector<1x128xf32> to vector<16x128xf32>
    %220 = arith.mulf %214, %219 : vector<16x128xf32>
    %221 = vector.broadcast %49 : vector<1x128xf32> to vector<16x128xf32>
    %222 = arith.mulf %214, %221 : vector<16x128xf32>
    %223 = vector.broadcast %56 : vector<1x128xf32> to vector<16x128xf32>
    %224 = arith.mulf %214, %223 : vector<16x128xf32>
    %225 = tpu.concatenate %218, %220, %222, %224 in 0 : vector<16x128xf32>, vector<16x128xf32>, vector<16x128xf32>, vector<16x128xf32> -> vector<64x128xf32>
    %226 = arith.truncf %225 : vector<64x128xf32> to vector<64x128xbf16>
    %227 = arith.truncf %215 : vector<16x128xf32> to vector<16x128xbf16>
    %228 = arith.truncf %216 : vector<16x128xf32> to vector<16x128xbf16>
    %cst_82 = arith.constant dense<0.000000e+00> : vector<64x16xf32>
    %229 = tpu.matmul %226, %227, %cst_82 {dimension_numbers = #tpu.dot_dimension_numbers<[1], [1], [0], [0], [0, 0, 1, 0], [], []>} : vector<64x128xbf16>, vector<16x128xbf16>, vector<64x16xf32> -> vector<64x16xf32>
    %230 = arith.addf %229, %27 : vector<64x16xf32>
    %cst_83 = arith.constant dense<0xFF800000> : vector<64xf32>
    %231 = vector.multi_reduction <maximumf>, %230, %cst_83 [1] : vector<64x16xf32> to vector<64xf32>
    %232 = vector.shape_cast %231 : vector<64xf32> to vector<64x1xf32>
    %233 = vector.broadcast %232 : vector<64x1xf32> to vector<64x16xf32>
    %234 = arith.subf %230, %233 : vector<64x16xf32>
    %235 = math.exp %234 : vector<64x16xf32>
    %cst_84 = arith.constant dense<0.000000e+00> : vector<64xf32>
    %236 = vector.multi_reduction <add>, %235, %cst_84 [1] : vector<64x16xf32> to vector<64xf32>
    %237 = vector.shape_cast %236 : vector<64xf32> to vector<64x1xf32>
    %238 = tpu.reciprocal %237 {approx = true} : vector<64x1xf32> -> vector<64x1xf32>
    %239 = vector.broadcast %238 : vector<64x1xf32> to vector<64x16xf32>
    %240 = arith.mulf %235, %239 : vector<64x16xf32>
    %241 = arith.truncf %240 : vector<64x16xf32> to vector<64x16xbf16>
    %cst_85 = arith.constant dense<0.000000e+00> : vector<64x128xf32>
    %242 = tpu.matmul %241, %228, %cst_85 {dimension_numbers = #tpu.dot_dimension_numbers<[1], [0], [0], [1], [0, 0, 1, 1], [], []>} : vector<64x16xbf16>, vector<16x128xbf16>, vector<64x128xf32> -> vector<64x128xf32>
    %cst_86 = arith.constant 0.000000e+00 : f32
    %243 = vector.broadcast %cst_86 : f32 to vector<16x128xf32>
    %244 = vector.extract_strided_slice %242 {offsets = [0, 0], sizes = [16, 128], strides = [1, 1]} : vector<64x128xf32> to vector<16x128xf32>
    %245 = vector.broadcast %35 : vector<1x128xf32> to vector<16x128xf32>
    %246 = arith.mulf %244, %245 : vector<16x128xf32>
    %247 = arith.addf %243, %246 : vector<16x128xf32>
    %248 = vector.extract_strided_slice %242 {offsets = [16, 0], sizes = [16, 128], strides = [1, 1]} : vector<64x128xf32> to vector<16x128xf32>
    %249 = vector.broadcast %42 : vector<1x128xf32> to vector<16x128xf32>
    %250 = arith.mulf %248, %249 : vector<16x128xf32>
    %251 = arith.addf %247, %250 : vector<16x128xf32>
    %252 = vector.extract_strided_slice %242 {offsets = [32, 0], sizes = [16, 128], strides = [1, 1]} : vector<64x128xf32> to vector<16x128xf32>
    %253 = vector.broadcast %49 : vector<1x128xf32> to vector<16x128xf32>
    %254 = arith.mulf %252, %253 : vector<16x128xf32>
    %255 = arith.addf %251, %254 : vector<16x128xf32>
    %256 = vector.extract_strided_slice %242 {offsets = [48, 0], sizes = [16, 128], strides = [1, 1]} : vector<64x128xf32> to vector<16x128xf32>
    %257 = vector.broadcast %56 : vector<1x128xf32> to vector<16x128xf32>
    %258 = arith.mulf %256, %257 : vector<16x128xf32>
    %259 = arith.addf %255, %258 : vector<16x128xf32>
    %260 = arith.truncf %259 : vector<16x128xf32> to vector<16x128xbf16>
    %c1_87 = arith.constant 1 : index
    %c0_88 = arith.constant 0 : index
    %c0_89 = arith.constant 0 : index
    %261 = vector.load %arg7[%c1_87, %c0_88, %c0_89] : memref<2x128x128xbf16, #tpu.memory_space<vmem>>, vector<1x128x128xbf16>
    %262 = vector.shape_cast %261 : vector<1x128x128xbf16> to vector<128x128xbf16>
    %cst_90 = arith.constant dense<0.000000e+00> : vector<16x128xf32>
    %263 = tpu.matmul %260, %262, %cst_90 {dimension_numbers = #tpu.dot_dimension_numbers<[1], [0], [0], [1], [0, 0, 1, 1], [], []>} : vector<16x128xbf16>, vector<128x128xbf16>, vector<16x128xf32> -> vector<16x128xf32>
    %c1_91 = arith.constant 1 : index
    %c0_92 = arith.constant 0 : index
    %c0_93 = arith.constant 0 : index
    %264 = vector.load %arg8[%c1_91, %c0_92, %c0_93] : memref<2x1x128xf32, #tpu.memory_space<vmem>>, vector<1x1x128xf32>
    %265 = vector.shape_cast %264 : vector<1x1x128xf32> to vector<1x128xf32>
    %266 = vector.broadcast %265 : vector<1x128xf32> to vector<16x128xf32>
    %267 = arith.addf %263, %266 : vector<16x128xf32>
    %268 = arith.addf %205, %267 : vector<16x128xf32>
    %c1_94 = arith.constant 1 : index
    %c0_95 = arith.constant 0 : index
    %c0_96 = arith.constant 0 : index
    %269 = vector.load %arg9[%c1_94, %c0_95, %c0_96] : memref<2x1x128xf32, #tpu.memory_space<vmem>>, vector<1x1x128xf32>
    %270 = vector.shape_cast %269 : vector<1x1x128xf32> to vector<1x128xf32>
    %c1_97 = arith.constant 1 : index
    %c0_98 = arith.constant 0 : index
    %c0_99 = arith.constant 0 : index
    %271 = vector.load %arg10[%c1_97, %c0_98, %c0_99] : memref<2x1x128xf32, #tpu.memory_space<vmem>>, vector<1x1x128xf32>
    %272 = vector.shape_cast %271 : vector<1x1x128xf32> to vector<1x128xf32>
    %cst_100 = arith.constant dense<0.000000e+00> : vector<16xf32>
    %273 = vector.multi_reduction <add>, %268, %cst_100 [1] : vector<16x128xf32> to vector<16xf32>
    %274 = vector.shape_cast %273 : vector<16xf32> to vector<16x1xf32>
    %cst_101 = arith.constant 3.125000e-02 : f32
    %275 = vector.broadcast %cst_101 : f32 to vector<16x1xf32>
    %276 = arith.mulf %274, %275 : vector<16x1xf32>
    %277 = arith.mulf %268, %268 : vector<16x128xf32>
    %cst_102 = arith.constant dense<0.000000e+00> : vector<16xf32>
    %278 = vector.multi_reduction <add>, %277, %cst_102 [1] : vector<16x128xf32> to vector<16xf32>
    %279 = vector.shape_cast %278 : vector<16xf32> to vector<16x1xf32>
    %cst_103 = arith.constant 3.125000e-02 : f32
    %280 = vector.broadcast %cst_103 : f32 to vector<16x1xf32>
    %281 = arith.mulf %279, %280 : vector<16x1xf32>
    %282 = arith.mulf %276, %276 : vector<16x1xf32>
    %283 = arith.subf %281, %282 : vector<16x1xf32>
    %cst_104 = arith.constant 0.000000e+00 : f32
    %284 = vector.broadcast %cst_104 : f32 to vector<16x1xf32>
    %285 = arith.maximumf %283, %284 : vector<16x1xf32>
    %286 = vector.broadcast %276 : vector<16x1xf32> to vector<16x128xf32>
    %287 = arith.subf %268, %286 : vector<16x128xf32>
    %cst_105 = arith.constant 9.99999996E-13 : f32
    %288 = vector.broadcast %cst_105 : f32 to vector<16x1xf32>
    %289 = arith.addf %285, %288 : vector<16x1xf32>
    %290 = math.rsqrt %289 : vector<16x1xf32>
    %291 = vector.broadcast %290 : vector<16x1xf32> to vector<16x128xf32>
    %292 = arith.mulf %287, %291 : vector<16x128xf32>
    %293 = vector.broadcast %270 : vector<1x128xf32> to vector<16x128xf32>
    %294 = arith.mulf %292, %293 : vector<16x128xf32>
    %295 = vector.broadcast %272 : vector<1x128xf32> to vector<16x128xf32>
    %296 = arith.addf %294, %295 : vector<16x128xf32>
    %297 = arith.truncf %296 : vector<16x128xf32> to vector<16x128xbf16>
    %c1_106 = arith.constant 1 : index
    %c0_107 = arith.constant 0 : index
    %c0_108 = arith.constant 0 : index
    %298 = vector.load %arg11[%c1_106, %c0_107, %c0_108] : memref<2x128x128xbf16, #tpu.memory_space<vmem>>, vector<1x128x128xbf16>
    %299 = vector.shape_cast %298 : vector<1x128x128xbf16> to vector<128x128xbf16>
    %cst_109 = arith.constant dense<0.000000e+00> : vector<16x128xf32>
    %300 = tpu.matmul %297, %299, %cst_109 {dimension_numbers = #tpu.dot_dimension_numbers<[1], [0], [0], [1], [0, 0, 1, 1], [], []>} : vector<16x128xbf16>, vector<128x128xbf16>, vector<16x128xf32> -> vector<16x128xf32>
    %c1_110 = arith.constant 1 : index
    %c0_111 = arith.constant 0 : index
    %c0_112 = arith.constant 0 : index
    %301 = vector.load %arg12[%c1_110, %c0_111, %c0_112] : memref<2x1x128xf32, #tpu.memory_space<vmem>>, vector<1x1x128xf32>
    %302 = vector.shape_cast %301 : vector<1x1x128xf32> to vector<1x128xf32>
    %303 = vector.broadcast %302 : vector<1x128xf32> to vector<16x128xf32>
    %304 = arith.addf %300, %303 : vector<16x128xf32>
    %cst_113 = arith.constant 5.000000e-01 : f32
    %305 = vector.broadcast %cst_113 : f32 to vector<16x128xf32>
    %306 = arith.mulf %305, %304 : vector<16x128xf32>
    %cst_114 = arith.constant 4.471500e-02 : f32
    %307 = vector.broadcast %cst_114 : f32 to vector<16x128xf32>
    %308 = arith.mulf %307, %304 : vector<16x128xf32>
    %309 = arith.mulf %308, %304 : vector<16x128xf32>
    %310 = arith.mulf %309, %304 : vector<16x128xf32>
    %311 = arith.addf %304, %310 : vector<16x128xf32>
    %cst_115 = arith.constant 0.797884583 : f32
    %312 = vector.broadcast %cst_115 : f32 to vector<16x128xf32>
    %313 = arith.mulf %312, %311 : vector<16x128xf32>
    %314 = math.tanh %313 : vector<16x128xf32>
    %cst_116 = arith.constant 1.000000e+00 : f32
    %315 = vector.broadcast %cst_116 : f32 to vector<16x128xf32>
    %316 = arith.addf %315, %314 : vector<16x128xf32>
    %317 = arith.mulf %306, %316 : vector<16x128xf32>
    %318 = arith.truncf %317 : vector<16x128xf32> to vector<16x128xbf16>
    %c1_117 = arith.constant 1 : index
    %c0_118 = arith.constant 0 : index
    %c0_119 = arith.constant 0 : index
    %319 = vector.load %arg13[%c1_117, %c0_118, %c0_119] : memref<2x128x128xbf16, #tpu.memory_space<vmem>>, vector<1x128x128xbf16>
    %320 = vector.shape_cast %319 : vector<1x128x128xbf16> to vector<128x128xbf16>
    %cst_120 = arith.constant dense<0.000000e+00> : vector<16x128xf32>
    %321 = tpu.matmul %318, %320, %cst_120 {dimension_numbers = #tpu.dot_dimension_numbers<[1], [0], [0], [1], [0, 0, 1, 1], [], []>} : vector<16x128xbf16>, vector<128x128xbf16>, vector<16x128xf32> -> vector<16x128xf32>
    %c1_121 = arith.constant 1 : index
    %c0_122 = arith.constant 0 : index
    %c0_123 = arith.constant 0 : index
    %322 = vector.load %arg14[%c1_121, %c0_122, %c0_123] : memref<2x1x128xf32, #tpu.memory_space<vmem>>, vector<1x1x128xf32>
    %323 = vector.shape_cast %322 : vector<1x1x128xf32> to vector<1x128xf32>
    %324 = vector.broadcast %323 : vector<1x128xf32> to vector<16x128xf32>
    %325 = arith.addf %321, %324 : vector<16x128xf32>
    %326 = arith.addf %296, %325 : vector<16x128xf32>
    %c1_124 = arith.constant 1 : index
    %c0_125 = arith.constant 0 : index
    %c0_126 = arith.constant 0 : index
    %327 = vector.load %arg15[%c1_124, %c0_125, %c0_126] : memref<2x1x128xf32, #tpu.memory_space<vmem>>, vector<1x1x128xf32>
    %328 = vector.shape_cast %327 : vector<1x1x128xf32> to vector<1x128xf32>
    %c1_127 = arith.constant 1 : index
    %c0_128 = arith.constant 0 : index
    %c0_129 = arith.constant 0 : index
    %329 = vector.load %arg16[%c1_127, %c0_128, %c0_129] : memref<2x1x128xf32, #tpu.memory_space<vmem>>, vector<1x1x128xf32>
    %330 = vector.shape_cast %329 : vector<1x1x128xf32> to vector<1x128xf32>
    %cst_130 = arith.constant dense<0.000000e+00> : vector<16xf32>
    %331 = vector.multi_reduction <add>, %326, %cst_130 [1] : vector<16x128xf32> to vector<16xf32>
    %332 = vector.shape_cast %331 : vector<16xf32> to vector<16x1xf32>
    %cst_131 = arith.constant 3.125000e-02 : f32
    %333 = vector.broadcast %cst_131 : f32 to vector<16x1xf32>
    %334 = arith.mulf %332, %333 : vector<16x1xf32>
    %335 = arith.mulf %326, %326 : vector<16x128xf32>
    %cst_132 = arith.constant dense<0.000000e+00> : vector<16xf32>
    %336 = vector.multi_reduction <add>, %335, %cst_132 [1] : vector<16x128xf32> to vector<16xf32>
    %337 = vector.shape_cast %336 : vector<16xf32> to vector<16x1xf32>
    %cst_133 = arith.constant 3.125000e-02 : f32
    %338 = vector.broadcast %cst_133 : f32 to vector<16x1xf32>
    %339 = arith.mulf %337, %338 : vector<16x1xf32>
    %340 = arith.mulf %334, %334 : vector<16x1xf32>
    %341 = arith.subf %339, %340 : vector<16x1xf32>
    %cst_134 = arith.constant 0.000000e+00 : f32
    %342 = vector.broadcast %cst_134 : f32 to vector<16x1xf32>
    %343 = arith.maximumf %341, %342 : vector<16x1xf32>
    %344 = vector.broadcast %334 : vector<16x1xf32> to vector<16x128xf32>
    %345 = arith.subf %326, %344 : vector<16x128xf32>
    %cst_135 = arith.constant 9.99999996E-13 : f32
    %346 = vector.broadcast %cst_135 : f32 to vector<16x1xf32>
    %347 = arith.addf %343, %346 : vector<16x1xf32>
    %348 = math.rsqrt %347 : vector<16x1xf32>
    %349 = vector.broadcast %348 : vector<16x1xf32> to vector<16x128xf32>
    %350 = arith.mulf %345, %349 : vector<16x128xf32>
    %351 = vector.broadcast %328 : vector<1x128xf32> to vector<16x128xf32>
    %352 = arith.mulf %350, %351 : vector<16x128xf32>
    %353 = vector.broadcast %330 : vector<1x128xf32> to vector<16x128xf32>
    %354 = arith.addf %352, %353 : vector<16x128xf32>
    %355 = vector.extract_strided_slice %354 {offsets = [0, 0], sizes = [1, 128], strides = [1, 1]} : vector<16x128xf32> to vector<1x128xf32>
    %356 = vector.extract_strided_slice %354 {offsets = [8, 0], sizes = [1, 128], strides = [1, 1]} : vector<16x128xf32> to vector<1x128xf32>
    %357 = tpu.concatenate %355, %356 in 0 : vector<1x128xf32>, vector<1x128xf32> -> vector<2x128xf32>
    %358 = arith.truncf %357 : vector<2x128xf32> to vector<2x128xbf16>
    %c0_136 = arith.constant 0 : index
    %c0_137 = arith.constant 0 : index
    %359 = vector.load %arg17[%c0_136, %c0_137] : memref<128x128xbf16, #tpu.memory_space<vmem>>, vector<128x128xbf16>
    %cst_138 = arith.constant dense<0.000000e+00> : vector<2x128xf32>
    %360 = tpu.matmul %358, %359, %cst_138 {dimension_numbers = #tpu.dot_dimension_numbers<[1], [0], [0], [1], [0, 0, 1, 1], [], []>} : vector<2x128xbf16>, vector<128x128xbf16>, vector<2x128xf32> -> vector<2x128xf32>
    %c0_139 = arith.constant 0 : index
    %c0_140 = arith.constant 0 : index
    %361 = vector.load %arg18[%c0_139, %c0_140] : memref<1x128xf32, #tpu.memory_space<vmem>>, vector<1x128xf32>
    %362 = vector.broadcast %361 : vector<1x128xf32> to vector<2x128xf32>
    %363 = arith.addf %360, %362 : vector<2x128xf32>
    %364 = math.tanh %363 : vector<2x128xf32>
    %c0_141 = arith.constant 0 : index
    %c0_142 = arith.constant 0 : index
    %365 = vector.load %arg19[%c0_141, %c0_142] : memref<2x128xf32, #tpu.memory_space<vmem>>, vector<2x128xf32>
    tpu.vector_store %arg19[%c0_141, %c0_142], %364 {strides = array<i32>} : memref<2x128xf32, #tpu.memory_space<vmem>>, vector<2x128xf32>,
    return
  }
  func.func @transform_0(%arg0: i32) -> (i32, i32) {
    %c0_i32 = arith.constant 0 : i32
    %c0_i32_0 = arith.constant 0 : i32
    %c0_i32_1 = arith.constant 0 : i32
    return %c0_i32, %c0_i32_0 : i32, i32
  }
  func.func @transform_1(%arg0: i32) -> (i32, i32) {
    %c0_i32 = arith.constant 0 : i32
    %c0_i32_0 = arith.constant 0 : i32
    %c0_i32_1 = arith.constant 0 : i32
    return %c0_i32, %c0_i32_0 : i32, i32
  }
  func.func @transform_2(%arg0: i32) -> (i32, i32) {
    %c0_i32 = arith.constant 0 : i32
    %c0_i32_0 = arith.constant 0 : i32
    %c0_i32_1 = arith.constant 0 : i32
    return %c0_i32, %c0_i32_0 : i32, i32
  }
  func.func @transform_3(%arg0: i32) -> (i32, i32) {
    %c0_i32 = arith.constant 0 : i32
    %c0_i32_0 = arith.constant 0 : i32
    %c0_i32_1 = arith.constant 0 : i32
    return %c0_i32, %c0_i32_0 : i32, i32
  }
  func.func @transform_4(%arg0: i32) -> (i32, i32, i32) {
    %c0_i32 = arith.constant 0 : i32
    %c0_i32_0 = arith.constant 0 : i32
    %c0_i32_1 = arith.constant 0 : i32
    %c0_i32_2 = arith.constant 0 : i32
    return %c0_i32, %c0_i32_0, %c0_i32_1 : i32, i32, i32
  }
  func.func @transform_5(%arg0: i32) -> (i32, i32, i32) {
    %c0_i32 = arith.constant 0 : i32
    %c0_i32_0 = arith.constant 0 : i32
    %c0_i32_1 = arith.constant 0 : i32
    %c0_i32_2 = arith.constant 0 : i32
    return %c0_i32, %c0_i32_0, %c0_i32_1 : i32, i32, i32
  }
  func.func @transform_6(%arg0: i32) -> (i32, i32, i32) {
    %c0_i32 = arith.constant 0 : i32
    %c0_i32_0 = arith.constant 0 : i32
    %c0_i32_1 = arith.constant 0 : i32
    %c0_i32_2 = arith.constant 0 : i32
    return %c0_i32, %c0_i32_0, %c0_i32_1 : i32, i32, i32
  }
  func.func @transform_7(%arg0: i32) -> (i32, i32, i32) {
    %c0_i32 = arith.constant 0 : i32
    %c0_i32_0 = arith.constant 0 : i32
    %c0_i32_1 = arith.constant 0 : i32
    %c0_i32_2 = arith.constant 0 : i32
    return %c0_i32, %c0_i32_0, %c0_i32_1 : i32, i32, i32
  }
  func.func @transform_8(%arg0: i32) -> (i32, i32, i32) {
    %c0_i32 = arith.constant 0 : i32
    %c0_i32_0 = arith.constant 0 : i32
    %c0_i32_1 = arith.constant 0 : i32
    %c0_i32_2 = arith.constant 0 : i32
    return %c0_i32, %c0_i32_0, %c0_i32_1 : i32, i32, i32
  }
  func.func @transform_9(%arg0: i32) -> (i32, i32, i32) {
    %c0_i32 = arith.constant 0 : i32
    %c0_i32_0 = arith.constant 0 : i32
    %c0_i32_1 = arith.constant 0 : i32
    %c0_i32_2 = arith.constant 0 : i32
    return %c0_i32, %c0_i32_0, %c0_i32_1 : i32, i32, i32
  }
  func.func @transform_10(%arg0: i32) -> (i32, i32, i32) {
    %c0_i32 = arith.constant 0 : i32
    %c0_i32_0 = arith.constant 0 : i32
    %c0_i32_1 = arith.constant 0 : i32
    %c0_i32_2 = arith.constant 0 : i32
    return %c0_i32, %c0_i32_0, %c0_i32_1 : i32, i32, i32
  }
  func.func @transform_11(%arg0: i32) -> (i32, i32, i32) {
    %c0_i32 = arith.constant 0 : i32
    %c0_i32_0 = arith.constant 0 : i32
    %c0_i32_1 = arith.constant 0 : i32
    %c0_i32_2 = arith.constant 0 : i32
    return %c0_i32, %c0_i32_0, %c0_i32_1 : i32, i32, i32
  }
  func.func @transform_12(%arg0: i32) -> (i32, i32, i32) {
    %c0_i32 = arith.constant 0 : i32
    %c0_i32_0 = arith.constant 0 : i32
    %c0_i32_1 = arith.constant 0 : i32
    %c0_i32_2 = arith.constant 0 : i32
    return %c0_i32, %c0_i32_0, %c0_i32_1 : i32, i32, i32
  }
  func.func @transform_13(%arg0: i32) -> (i32, i32, i32) {
    %c0_i32 = arith.constant 0 : i32
    %c0_i32_0 = arith.constant 0 : i32
    %c0_i32_1 = arith.constant 0 : i32
    %c0_i32_2 = arith.constant 0 : i32
    return %c0_i32, %c0_i32_0, %c0_i32_1 : i32, i32, i32
  }
  func.func @transform_14(%arg0: i32) -> (i32, i32, i32) {
    %c0_i32 = arith.constant 0 : i32
    %c0_i32_0 = arith.constant 0 : i32
    %c0_i32_1 = arith.constant 0 : i32
    %c0_i32_2 = arith.constant 0 : i32
    return %c0_i32, %c0_i32_0, %c0_i32_1 : i32, i32, i32
  }
  func.func @transform_15(%arg0: i32) -> (i32, i32, i32) {
    %c0_i32 = arith.constant 0 : i32
    %c0_i32_0 = arith.constant 0 : i32
    %c0_i32_1 = arith.constant 0 : i32
    %c0_i32_2 = arith.constant 0 : i32
    return %c0_i32, %c0_i32_0, %c0_i32_1 : i32, i32, i32
  }
  func.func @transform_16(%arg0: i32) -> (i32, i32) {
    %c0_i32 = arith.constant 0 : i32
    %c0_i32_0 = arith.constant 0 : i32
    %c0_i32_1 = arith.constant 0 : i32
    return %c0_i32, %c0_i32_0 : i32, i32
  }
  func.func @transform_17(%arg0: i32) -> (i32, i32) {
    %c0_i32 = arith.constant 0 : i32
    %c0_i32_0 = arith.constant 0 : i32
    %c0_i32_1 = arith.constant 0 : i32
    return %c0_i32, %c0_i32_0 : i32, i32
  }
  func.func @transform_18(%arg0: i32) -> (i32, i32) {
    %c0_i32 = arith.constant 0 : i32
    %c0_i32_0 = arith.constant 0 : i32
    %c0_i32_1 = arith.constant 0 : i32
    return %c0_i32, %c0_i32_0 : i32, i32
  }
}

</mosaic_0001>

<bundles_post_ra>
// kernel: text_encoder_forward.1
= control target key start
LH: loop header
LB: loop body
LE: loop exit
PB: predicated region body
PF: predicated region fallthrough
CT: control target
= control target key end

     0   :  { %s3797_s0 = inlined_call_operand.vmem [shape: f32[16,128], index: 0, kind: input, shape index: {}]   ;;  %s3798_s1 = inlined_call_operand.vmem [shape: f32[64,16], index: 1, kind: input, shape index: {}]   ;;  %s3799_s2 = inlined_call_operand.vmem [shape: f32[1,128], index: 2, kind: input, shape index: {}]   ;;  %s3800_s3 = inlined_call_operand.vmem [shape: f32[1,128], index: 3, kind: input, shape index: {}]   ;;  %s3801_s4 = inlined_call_operand.vmem [shape: bf16[2,128,384], index: 4, kind: input, shape index: {}]   ;;  %s3802_s5 = inlined_call_operand.vmem [shape: f32[2,1,384], index: 5, kind: input, shape index: {}]   ;;  %s3803_s6 = inlined_call_operand.hbm [shape: bf16[2,128,128], index: 6, kind: input, shape index: {}]   ;;  %s3804_s7 = inlined_call_operand.vmem [shape: f32[2,1,128], index: 7, kind: input, shape index: {}]   ;;  %s3805_s8 = inlined_call_operand.vmem [shape: f32[2,1,128], index: 8, kind: input, shape index: {}]   ;;  %s3806_s9 = inlined_call_operand.vmem [shape: f32[2,1,128], index: 9, kind: input, shape index: {}]   ;;  %s3807_s10 = inlined_call_operand.hbm [shape: bf16[2,128,128], index: 10, kind: input, shape index: {}]   ;;  %s3808_s11 = inlined_call_operand.vmem [shape: f32[2,1,128], index: 11, kind: input, shape index: {}]   ;;  %s3809_s12 = inlined_call_operand.hbm [shape: bf16[2,128,128], index: 12, kind: input, shape index: {}]   ;;  %s3810_s13 = inlined_call_operand.vmem [shape: f32[2,1,128], index: 13, kind: input, shape index: {}]   ;;  %s3811_s14 = inlined_call_operand.vmem [shape: f32[2,1,128], index: 14, kind: input, shape index: {}]   ;;  %s3812_s15 = inlined_call_operand.vmem [shape: f32[2,1,128], index: 15, kind: input, shape index: {}]   ;;  %s3813_s16 = inlined_call_operand.vmem [shape: bf16[128,128], index: 16, kind: input, shape index: {}]   ;;  %s3814_s17 = inlined_call_operand.vmem [shape: f32[1,128], index: 17, kind: input, shape index: {}]   ;;  %s3815_s18 = inlined_call_operand.hbm [shape: f32[2,128], index: 18, kind: output, shape index: {}]  }
   0x1   :  { %3818 = sst [smem:[#allocation12_spill]] %s3797_s0 }
   0x2   :  { %3819 = sst [smem:[#allocation13_spill]] %s3798_s1 }
   0x3   :  { %3820 = sst [smem:[#allocation14_spill]] %s3799_s2 }
   0x4   :  { %23 = vsyncpa [#allocation3], 0 }
   0x5   :  { %24 = vsyncpa [#allocation6], 0 }
   0x6   :  { %25 = vsyncpa [#allocation4], 0  ;;  %s3097_s27 = smov [#allocation5]   ;;  %s3098_s29 = smov [#allocation2]  }
   0x7   :  { %s61_s28 = sshll.u32 %s3097_s27, 4  ;;  %s43_s30 = sshll.u32 %s3098_s29, 4  ;;  %s62_s28 = int_to_ptr.vmem [resolvable:$true] %s61_s28  ;;  %s3201_s30 = int_to_ptr.vmem [resolvable:$true] %s43_s30 }
   0x8   :  { %s3003_s1 = scalar_lea.hbm %s3807_s10, 2048 }
   0x9   :  { %p3004_p0 = scmp.ne.s32.totalorder %s3807_s10, %s3003_s1  ;;  %p3007_p1 = scmp.lt.u32.totalorder %s3003_s1, %s3807_s10 }
   0xb   :  { %p3009_p2 = pnand %p3007_p1, %p3004_p0 }
   0xd   :  { %3012 = shalt.err (!%p3009_p2)
}
   0xe   :  { %s3013_s23 = scalar_lea.vmem %s62_s28, 2048  ;;  %p3018_p4 = scmp.lt.s32.totalorder %s62_s28, %s62_s28 }
   0xf   :  { %p3014_p3 = scmp.ne.s32.totalorder %s62_s28, %s3013_s23  ;;  %p3019_p5 = scmp.lt.s32.totalorder %s3013_s23, %s3013_s23 }
  0x11   :  { %p3020_p6 = por %p3019_p5, %p3018_p4 }
  0x13   :  { %p3021_p7 = pnand %p3020_p6, %p3014_p3 }
  0x15   :  { %3024 = shalt.err (!%p3021_p7)
}
  0x16   :  { %s3099_s24 = smov 64   ;;  %s3100_s25 = smov 4  }
  0x17   :  { %67 = dma.hbm_to_vmem [thread:$0]  %s3807_s10, 2048, %s62_s28, [#allocation6], %s3099_s24, %s3099_s24, %s3100_s25  }
  0x18   :  { %s3025_s19 = scalar_lea.hbm %s3803_s6, 2048 }
  0x19   :  { %p3026_p8 = scmp.ne.s32.totalorder %s3803_s6, %s3025_s19  ;;  %p3029_p9 = scmp.lt.u32.totalorder %s3025_s19, %s3803_s6 }
  0x1b   :  { %p3031_p10 = pnand %p3029_p9, %p3026_p8 }
  0x1d   :  { %3034 = shalt.err (!%p3031_p10)
}
  0x1e   :  { %s3035_s2 = scalar_lea.vmem %s3201_s30, 2048  ;;  %p3040_p12 = scmp.lt.s32.totalorder %s3201_s30, %s3201_s30 }
  0x1f   :  { %p3036_p11 = scmp.ne.s32.totalorder %s3201_s30, %s3035_s2  ;;  %p3041_p13 = scmp.lt.s32.totalorder %s3035_s2, %s3035_s2 }
  0x21   :  { %p3042_p0 = por %p3041_p13, %p3040_p12 }
  0x23   :  { %p3043_p1 = pnand %p3042_p0, %p3036_p11 }
  0x25   :  { %3046 = shalt.err (!%p3043_p1)
}
  0x26   :  { %49 = dma.hbm_to_vmem [thread:$0]  %s3803_s6, 2048, %s3201_s30, [#allocation3], %s3099_s24, %s3099_s24, %s3100_s25  }
  0x27   :  { %s3101_s23 = smov [#allocation7]   ;;  %s3047_s0 = scalar_lea.hbm %s3809_s12, 2048 }
  0x28   :  { %s75_s26 = sshll.u32 %s3101_s23, 4  ;;  %p3048_p2 = scmp.ne.s32.totalorder %s3809_s12, %s3047_s0  ;;  %s76_s26 = int_to_ptr.vmem [resolvable:$true] %s75_s26 }
  0x29   :  { %p3051_p3 = scmp.lt.u32.totalorder %s3047_s0, %s3809_s12 }
  0x2b   :  { %p3053_p4 = pnand %p3051_p3, %p3048_p2 }
  0x2d   :  { %3056 = shalt.err (!%p3053_p4)
}
  0x2e   :  { %s3057_s22 = scalar_lea.vmem %s76_s26, 2048  ;;  %p3062_p6 = scmp.lt.s32.totalorder %s76_s26, %s76_s26 }
  0x2f   :  { %p3058_p5 = scmp.ne.s32.totalorder %s76_s26, %s3057_s22  ;;  %p3063_p7 = scmp.lt.s32.totalorder %s3057_s22, %s3057_s22 }
  0x31   :  { %p3064_p8 = por %p3063_p7, %p3062_p6 }
  0x33   :  { %p3065_p9 = pnand %p3064_p8, %p3058_p5 }
  0x35   :  { %3068 = shalt.err (!%p3065_p9)
}
  0x36   :  { %81 = dma.hbm_to_vmem [thread:$0]  %s3809_s12, 2048, %s76_s26, [#allocation6], %s3099_s24, %s3099_s24, %s3100_s25  }
  0x37   :  { %3091 = dma.done.wait [#allocation3], 2048  }
  0x38   :  { %3092 = vsyncadd [#allocation3], 4294965248 }
  0x39   :  { %3093 = dma.done.wait [#allocation6], 4096  }
  0x3a   :  { %3094 = vsyncadd [#allocation6], 4294963200  ;;  %s3821_s28 = sld [smem:[#allocation12_spill]]  ;;  %v2789_v4 = vld [vmem:[%s3801_s4 + $0x4] ss:$12 sps:$4 sm:$0xff]   ;;  %v3102_v7 = vmov 0.0   ;;  %v158_v59 = vlaneseq }
  0x3b   :  { %v2791_v5 = vld [vmem:[%s3801_s4] ss:$12 sps:$4 sm:$0xff]   ;;  %v2792_v6 = vld [vmem:[%s3801_s4 + $0x8] ss:$12 sps:$4 sm:$0xff]   ;;  %358 = vmatprep.subr.bf16.mxu0 %v2789_v4  ;;  %2560 = vmatprep.subr.bf16.mxu1 %v3102_v7  ;;  %v2795_v9 = vld [vmem:[%s3801_s4 + $0x18] ss:$12 sps:$4 sm:$0xff]  }
  0x3c   :  { %359 = vmatpush1.bf16.msra.mxu0 %v2791_v5  ;;  %2561 = vmatpush3.bf16.msra.mxu1 %v2792_v6  ;;  %v2793_v8 = vld [vmem:[%s3801_s4 + $0x1c] ss:$12 sps:$4 sm:$0xff]   ;;  %v2796_v10 = vld [vmem:[%s3801_s4 + $0x20] ss:$12 sps:$4 sm:$0xff]   ;;  %v2800_v13 = vld [vmem:[%s3801_s4 + $0x38] ss:$12 sps:$4 sm:$0xff]  }
  0x3d   :  { %2562 = vmatprep.subr.bf16.mxu1 %v3102_v7  ;;  %360 = vmatprep.subr.bf16.mxu0 %v2793_v8  ;;  %v2797_v11 = vld [vmem:[%s3801_s4 + $0x34] ss:$12 sps:$4 sm:$0xff]   ;;  %v2799_v12 = vld [vmem:[%s3801_s4 + $0x30] ss:$12 sps:$4 sm:$0xff]   ;;  %v2801_v14 = vld [vmem:[%s3801_s4 + $0x4c] ss:$12 sps:$4 sm:$0xff]  }
  0x3e   :  { %v2803_v15 = vld [vmem:[%s3801_s4 + $0x48] ss:$12 sps:$4 sm:$0xff]   ;;  %v2804_v16 = vld [vmem:[%s3801_s4 + $0x50] ss:$12 sps:$4 sm:$0xff]   ;;  %v2807_v18 = vld [vmem:[%s3801_s4 + $0x60] ss:$12 sps:$4 sm:$0xff]  }
  0x3f   :  { %v2805_v17 = vld [vmem:[%s3801_s4 + $0x64] ss:$12 sps:$4 sm:$0xff]   ;;  %v2808_v19 = vld [vmem:[%s3801_s4 + $0x68] ss:$12 sps:$4 sm:$0xff]   ;;  %v2812_v22 = vld [vmem:[%s3801_s4 + $0x80] ss:$12 sps:$4 sm:$0xff]  }
  0x40   :  { %v3256_v0 = vld [vmem:[%s3821_s28] sm:$0xff]  ;;  %v3261_v1 = vld [vmem:[%s3821_s28 + $0x8] sm:$0xff]  ;;  %361 = vmatpush1.bf16.msra.mxu0 %v2795_v9  ;;  %2563 = vmatpush3.bf16.msra.mxu1 %v2796_v10  ;;  %v2815_v24 = vld [vmem:[%s3801_s4 + $0x90] ss:$12 sps:$4 sm:$0xff]   ;;  %v3103_v26 = vmov 0   ;;  %vm3104_vm0 = vmmov 0  }
  0x41   :  { %106 = vadd.xlane.f32.xlu0 %v3256_v0  ;;  %v112_v2 = vmul.f32 %v3256_v0, %v3256_v0  ;;  %v113_v3 = vmul.f32 %v3261_v1, %v3261_v1  ;;  %2564 = vmatprep.subr.bf16.mxu1 %v3102_v7  ;;  %v2809_v20 = vld [vmem:[%s3801_s4 + $0x7c] ss:$12 sps:$4 sm:$0xff]   ;;  %v2811_v21 = vld [vmem:[%s3801_s4 + $0x78] ss:$12 sps:$4 sm:$0xff]   ;;  %v2813_v23 = vld [vmem:[%s3801_s4 + $0x94] ss:$12 sps:$4 sm:$0xff]  }
  0x42   :  { %362 = vmatprep.subr.bf16.mxu0 %v2797_v11  ;;  %v2816_v25 = vld [vmem:[%s3801_s4 + $0x98] ss:$12 sps:$4 sm:$0xff]   ;;  %390 = vmatprep.mubr.bf16.mxu0 %v3103_v26  ;;  %v2819_v28 = vld [vmem:[%s3801_s4 + $0xa8] ss:$12 sps:$4 sm:$0xff]   ;;  %v2820_v29 = vld [vmem:[%s3801_s4 + $0xb0] ss:$12 sps:$4 sm:$0xff]  }
  0x43   :  { %114 = vadd.xlane.f32.xlu1 %v112_v2  ;;  %2576 = vmatprep.mubr.msk.bf16.mxu1 %vm3104_vm0, %v3102_v7  ;;  %v2817_v27 = vld [vmem:[%s3801_s4 + $0xac] ss:$12 sps:$4 sm:$0xff]   ;;  %s3822_s10 = sld [smem:[#allocation14_spill]]  ;;  %v2287_v54 = vld [vmem:[%s3800_s3] ss:$0 sm:$0xff]  ;;  %v3366_v60 = vshrl.u32 %v158_v59, 7 }
  0x44   :  { %363 = vmatpush1.bf16.msra.mxu0 %v2799_v12  ;;  %2565 = vmatpush3.bf16.msra.mxu1 %v2800_v13  ;;  %v159_v61 = vand.u32 127, %v158_v59  ;;  %v213_v63 = vld [vmem:[%s3802_s5] sm:$0x7]  ;;  %s3823_s25 = sld [smem:[#allocation13_spill]]  ;;  %vm521_vm11 = vcmask 130048   ;;  %vm2154_vm12 = vcmask 1040384  }
  0x45   :  { %108 = vadd.xlane.f32.xlu0 %v3261_v1  ;;  %2566 = vmatprep.subr.bf16.mxu1 %v3102_v7  ;;  %v217_v62 = vsub.s32 0, %v3366_v60 }
  0x46   :  { %364 = vmatprep.subr.bf16.mxu0 %v2801_v14  ;;  %vm165_vm1 = vcmp.ge.s32.totalorder %v159_v61, 8  ;;  %vm166_vm2 = vcmp.lt.s32.totalorder %v159_v61, 16  ;;  %vm170_vm3 = vcmp.ge.s32.totalorder %v159_v61, 16  ;;  %vm171_vm4 = vcmp.lt.s32.totalorder %v159_v61, 24 }
  0x47   :  { %116 = vadd.xlane.f32.xlu1 %v113_v3  ;;  %vm175_vm5 = vcmp.ge.s32.totalorder %v159_v61, 24  ;;  %vm176_vm6 = vcmp.lt.s32.totalorder %v159_v61, 32  ;;  %vm167_vm7 = vmand %vm165_vm1, %vm166_vm2  ;;  %v218_v2 = vrot.slane %v213_v63, %v217_v62  ;;  %vm161_vm8 = vcmp.lt.s32.totalorder %v159_v61, 8 }
  0x48   :  { %365 = vmatpush1.bf16.msra.mxu0 %v2803_v15  ;;  %2567 = vmatpush3.bf16.msra.mxu1 %v2804_v16  ;;  %vm172_vm9 = vmand %vm170_vm3, %vm171_vm4  ;;  %v3381_v8 = vsel %vm167_vm7, 1.0, %v3102_v7  ;;  %v3384_v12 = vsel %vm161_vm8, 1.0, %v3102_v7 }
  0x49   :  { %2568 = vmatprep.subr.bf16.mxu1 %v3102_v7  ;;  %366 = vmatprep.subr.bf16.mxu0 %v2805_v17  ;;  %v2286_v49 = vld [vmem:[%s3822_s10] ss:$0 sm:$0xff]  ;;  %vm177_vm10 = vmand %vm175_vm5, %vm176_vm6  ;;  %v3387_v13 = vsel %vm172_vm9, 1.0, %v3102_v7 }
  0x4a   :  { %v3390_v16 = vsel %vm177_vm10, 1.0, %v3102_v7  ;;  %v3444_v61 = vld [vmem:[%s3823_s25 + $0x28] sm:$0xff] }
  0x4c   :  { %367 = vmatpush1.bf16.msra.mxu0 %v2807_v18  ;;  %2569 = vmatpush3.bf16.msra.mxu1 %v2808_v19 }
  0x4d   :  { %368 = vmatprep.subr.bf16.mxu0 %v2809_v20  ;;  %2570 = vmatprep.subr.bf16.mxu1 %v3102_v7 }
  0x50   :  { %369 = vmatpush1.bf16.msra.mxu0 %v2811_v21  ;;  %2571 = vmatpush3.bf16.msra.mxu1 %v2812_v22 }
  0x51   :  { %370 = vmatprep.subr.bf16.mxu0 %v2813_v23  ;;  %2572 = vmatprep.subr.bf16.mxu1 %v3102_v7 }
  0x54   :  { %371 = vmatpush1.bf16.msra.mxu0 %v2815_v24  ;;  %2573 = vmatpush3.bf16.msra.mxu1 %v2816_v25 }
  0x55   :  { %372 = vmatprep.subr.bf16.mxu0 %v2817_v27  ;;  %2574 = vmatprep.subr.bf16.mxu1 %v3102_v7 }
  0x58   :  { %373 = vmatpush1.bf16.msra.mxu0 %v2819_v28  ;;  %2575 = vmatpush3.bf16.msra.mxu1 %v2820_v29 }
  0xce   :  { %v107_v30 = vpop.xlane.xlu0 %106 }
  0xcf   :  { %v110_v31 = vmul.f32 0.03125, %v107_v30 }
  0xd0   :  { %v115_v32 = vpop.xlane.xlu1 %114 }
  0xd1   :  { %v120_v33 = vmul.f32 %v110_v31, %v110_v31  ;;  %v118_v34 = vmul.f32 0.03125, %v115_v32  ;;  %v126_v46 = vsub.f32 %v3256_v0, %v110_v31  ;;  %v225_v0 = vsub.s32 2, %v3366_v60 }
  0xd2   :  { %v109_v35 = vpop.xlane.xlu0 %108 }
  0xd3   :  { %v122_v36 = vsub.f32 %v118_v34, %v120_v33  ;;  %v111_v37 = vmul.f32 0.03125, %v109_v35  ;;  %v226_v3 = vrot.slane %v213_v63, %v225_v0 }
  0xd4   :  { %v117_v38 = vpop.xlane.xlu1 %116 }
  0xd5   :  { %v124_v39 = vmax.f32 %v122_v36, 0.0  ;;  %v121_v40 = vmul.f32 %v111_v37, %v111_v37  ;;  %v119_v41 = vmul.f32 0.03125, %v117_v38  ;;  %v127_v50 = vsub.f32 %v3261_v1, %v111_v37 }
  0xd6   :  { %v221_v1 = vsub.s32 1, %v3366_v60 }
  0xd7   :  { %v128_v42 = vadd.f32 1e-12, %v124_v39  ;;  %v123_v43 = vsub.f32 %v119_v41, %v121_v40  ;;  %v3407_v39 = vld [vmem:[%s3823_s25] sm:$0xff]  ;;  %v3412_v41 = vld [vmem:[%s3823_s25 + $0x10] sm:$0xff] }
  0xd8   :  { %v222_v4 = vrot.slane %v213_v63, %v221_v1 }
  0xd9   :  { %2909 = vrsqrt.f32 %v128_v42  ;;  %v125_v44 = vmax.f32 %v123_v43, 0.0  ;;  %v3417_v43 = vld [vmem:[%s3823_s25 + $0x8] sm:$0xff] }
  0xdb   :  { %v129_v45 = vadd.f32 1e-12, %v125_v44 }
  0xdd   :  { %2911 = vrsqrt.f32 %v129_v45 }
  0xe3   :  { %v2910_v47 = vpop.eup %2909 }
  0xe4   :  { %v132_v48 = vmul.f32 %v2910_v47, %v126_v46  ;;  %v3423_v46 = vld [vmem:[%s3823_s25 + $0x18] sm:$0xff] }
  0xe6   :  { %v140_v53 = vmul.f32 %v2286_v49, %v132_v48 }
  0xe7   :  { %v2912_v51 = vpop.eup %2911 }
  0xe8   :  { %v133_v52 = vmul.f32 %v2912_v51, %v127_v50  ;;  %v3360_v56 = vadd.f32 %v2287_v54, %v140_v53  ;;  %v3433_v53 = vld [vmem:[%s3823_s25 + $0x20] sm:$0xff] }
  0xea   :  { %v141_v55 = vmul.f32 %v2286_v49, %v133_v52 }
  0xec   :  { %v3362_v57 = vadd.f32 %v2287_v54, %v141_v55 }
  0xee   :  { %v180_v58 = vpack.c.bf16 %v3362_v57, %v3360_v56 }
  0xf0   :  { %391 = vmatmul.mubr.bf16.vlgmr.msra.gmra.mrb[0].mxu0 %v180_v58  ;;  %2577 = vmatmul.mubr.bf16.vlgmr.msra.gmra.mrb[0].mxu1 %v180_v58  ;;  %v3439_v58 = vld [vmem:[%s3823_s25 + $0x30] sm:$0xff] }
 0x1c3   :  { %v392_v5 = vpop.f32.mrb[0].mxu0  ;;  %v435_v6 = vpop.f32.mrb[0].mxu1 }
 0x1c4   :  { %v393_v9 = vadd.f32 %v392_v5, %v218_v2  ;;  %v394_v10 = vpop.f32.mrb[1].mxu0  ;;  %v2578_v11 = vpop.f32.mrb[1].mxu1  ;;  %v436_v17 = vadd.f32 %v435_v6, %v226_v3 }
 0x1c5   :  { %v396_v14 = vpop.f32.mrb[2].mxu0  ;;  %v438_v15 = vpop.f32.mrb[2].mxu1  ;;  %v395_v18 = vadd.f32 %v394_v10, %v222_v4 }
 0x1c6   :  { %v397_v19 = vadd.f32 %v396_v14, %v218_v2  ;;  %v439_v20 = vadd.f32 %v438_v15, %v226_v3  ;;  %v398_v21 = vpop.f32.mrb[3].mxu0  ;;  %v2579_v22 = vpop.f32.mrb[3].mxu1  ;;  %v444_v23 = vmul.f32 %v3381_v8, %v393_v9  ;;  %v442_v25 = vmul.f32 %v3384_v12, %v393_v9 }
 0x1c7   :  { %v399_v24 = vadd.f32 %v398_v21, %v222_v4  ;;  %v446_v27 = vmul.f32 %v3387_v13, %v393_v9  ;;  %v448_v33 = vmul.f32 %v3390_v16, %v393_v9  ;;  %v3451_v4 = vld [vmem:[%s3823_s25 + $0x38] sm:$0xff] }
 0x1c8   :  { %v445_v28 = vmul.f32 %v3381_v8, %v397_v19  ;;  %v455_v29 = vpack.c.bf16 %v439_v20, %v436_v17  ;;  %v443_v30 = vmul.f32 %v3384_v12, %v397_v19  ;;  %v447_v31 = vmul.f32 %v3387_v13, %v397_v19 }
 0x1c9   :  { %v454_v32 = vpack.c.bf16 %v399_v24, %v395_v18  ;;  %v449_v34 = vmul.f32 %v3390_v16, %v397_v19 }
 0x1ca   :  { %2590 = vmatprep.subr.bf16.mxu1 %v455_v29  ;;  %v450_v35 = vpack.c.bf16 %v443_v30, %v442_v25  ;;  %v451_v36 = vpack.c.bf16 %v445_v28, %v444_v23  ;;  %v452_v37 = vpack.c.bf16 %v447_v31, %v446_v27 }
 0x1cb   :  { %2580 = vmatprep.subr.bf16.mxu0 %v454_v32  ;;  %2591 = vmatpush3.bf16.msra.mxu1 %v455_v29  ;;  %v453_v38 = vpack.c.bf16 %v449_v34, %v448_v33 }
 0x1cc   :  { %2581 = vmatpush3.bf16.xpose.msra.mxu0 %v454_v32  ;;  %2582 = vmatprep.mubr.bf16.mxu0 %v450_v35 }
 0x1cd   :  { %2600 = vmatprep.subr.bf16.mxu0 %v3102_v7  ;;  %2620 = vmatprep.subr.bf16.mxu1 %v3102_v7 }
 0x1d3   :  { %2583 = vmatmul.mubr.bf16.vlgmr.msra.gmra.mrb[4].mxu0 %v451_v36 }
 0x1d4   :  { %2586 = vmatprep.mubr.bf16.mxu0 %v452_v37 }
 0x1db   :  { %2587 = vmatmul.mubr.bf16.gmra.mrb[8].mxu0 %v453_v38 }
 0x1dc   :  { %2616 = vmatprep.mubr.msk.bf16.mxu0 %vm3104_vm0, %v3102_v7 }
 0x2a6   :  { %v2584_v40 = vpop.f32.mrb[4].mxu0 }
 0x2a7   :  { %v490_v42 = vpop.f32.mrb[5].mxu0  ;;  %v499_v48 = vadd.f32 %v2584_v40, %v3412_v41 }
 0x2a8   :  { %v491_v44 = vadd.f32 %v490_v42, %v3407_v39  ;;  %v2585_v45 = vpop.f32.mrb[6].mxu0 }
 0x2a9   :  { %v493_v47 = vpop.f32.mrb[7].mxu0  ;;  %v502_v51 = vadd.f32 %v2585_v45, %v3423_v46  ;;  %v528_v55 = vsel %vm521_vm11, %v499_v48, -inf }
 0x2aa   :  { %v494_v49 = vadd.f32 %v493_v47, %v3417_v43  ;;  %v522_v50 = vsel %vm521_vm11, %v491_v44, -inf }
 0x2ab   :  { %523 = vmax.xlane.f32.xlu0 %v522_v50  ;;  %v531_v3 = vsel %vm521_vm11, %v502_v51, -inf }
 0x2ac   :  { %v525_v52 = vsel %vm521_vm11, %v494_v49, -inf }
 0x2ad   :  { %526 = vmax.xlane.f32.xlu1 %v525_v52 }
 0x2ae   :  { %v2588_v54 = vpop.f32.mrb[8].mxu0 }
 0x2af   :  { %v506_v59 = vpop.f32.mrb[9].mxu0  ;;  %529 = vmax.xlane.f32.xlu0 %v528_v55  ;;  %v515_v6 = vadd.f32 %v2588_v54, %v3439_v58 }
 0x2b0   :  { %v507_v63 = vadd.f32 %v506_v59, %v3433_v53  ;;  %v2589_v2 = vpop.f32.mrb[10].mxu0 }
 0x2b1   :  { %v509_v5 = vpop.f32.mrb[11].mxu0  ;;  %532 = vmax.xlane.f32.xlu1 %v531_v3  ;;  %v518_v11 = vadd.f32 %v2589_v2, %v3451_v4  ;;  %v540_v15 = vsel %vm521_vm11, %v515_v6, -inf }
 0x2b2   :  { %v510_v9 = vadd.f32 %v509_v5, %v3444_v61  ;;  %v534_v10 = vsel %vm521_vm11, %v507_v63, -inf }
 0x2b3   :  { %535 = vmax.xlane.f32.xlu0 %v534_v10  ;;  %v543_v17 = vsel %vm521_vm11, %v518_v11, -inf }
 0x2b4   :  { %v537_v14 = vsel %vm521_vm11, %v510_v9, -inf }
 0x2b5   :  { %538 = vmax.xlane.f32.xlu1 %v537_v14  ;;  %v2822_v14 = vld [vmem:[#allocation2 + $0x8] sm:$0xff]  }
 0x2b7   :  { %541 = vmax.xlane.f32.xlu0 %v540_v15  ;;  %v2823_v15 = vld [vmem:[#allocation2 + $0x10] sm:$0xff]  }
 0x2b9   :  { %544 = vmax.xlane.f32.xlu1 %v543_v17 }
 0x338   :  { %v524_v18 = vpop.xlane.xlu0 %523 }
 0x339   :  { %v546_v19 = vsub.f32 %v491_v44, %v524_v18 }
 0x33a   :  { %v527_v20 = vpop.xlane.xlu1 %526 }
 0x33b   :  { %v554_v21 = vmul.f32 1.442695, %v546_v19  ;;  %v547_v22 = vsub.f32 %v494_v49, %v527_v20 }
 0x33c   :  { %v530_v23 = vpop.xlane.xlu0 %529 }
 0x33d   :  { %2913 = vpow2.f32 %v554_v21  ;;  %v556_v24 = vmul.f32 1.442695, %v547_v22  ;;  %v548_v25 = vsub.f32 %v499_v48, %v530_v23 }
 0x33e   :  { %v533_v27 = vpop.xlane.xlu1 %532 }
 0x33f   :  { %2915 = vpow2.f32 %v556_v24  ;;  %v558_v28 = vmul.f32 1.442695, %v548_v25  ;;  %v549_v29 = vsub.f32 %v502_v51, %v533_v27 }
 0x340   :  { %v536_v30 = vpop.xlane.xlu0 %535 }
 0x341   :  { %2917 = vpow2.f32 %v558_v28  ;;  %v560_v31 = vmul.f32 1.442695, %v549_v29  ;;  %v550_v32 = vsub.f32 %v507_v63, %v536_v30 }
 0x342   :  { %v539_v33 = vpop.xlane.xlu1 %538 }
 0x343   :  { %2919 = vpow2.f32 %v560_v31  ;;  %v562_v34 = vmul.f32 1.442695, %v550_v32  ;;  %v551_v35 = vsub.f32 %v510_v9, %v539_v33 }
 0x344   :  { %v542_v36 = vpop.xlane.xlu0 %541 }
 0x345   :  { %2921 = vpow2.f32 %v562_v34  ;;  %v564_v37 = vmul.f32 1.442695, %v551_v35  ;;  %v552_v38 = vsub.f32 %v515_v6, %v542_v36 }
 0x346   :  { %v545_v40 = vpop.xlane.xlu1 %544 }
 0x347   :  { %v2914_v42 = vpop.eup %2913  ;;  %2923 = vpow2.f32 %v564_v37  ;;  %v566_v44 = vmul.f32 1.442695, %v552_v38  ;;  %v553_v45 = vsub.f32 %v518_v11, %v545_v40  ;;  %v2821_v11 = vld [vmem:[#allocation2] sm:$0xff]  }
 0x348   :  { %v570_v47 = vsel %vm521_vm11, %v2914_v42, 0.0  ;;  %2601 = vmatpush3.bf16.msra.mxu0 %v2821_v11 }
 0x349   :  { %v2916_v48 = vpop.eup %2915  ;;  %2925 = vpow2.f32 %v566_v44  ;;  %v568_v49 = vmul.f32 1.442695, %v553_v45  ;;  %571 = vadd.xlane.f32.xlu0 %v570_v47  ;;  %2602 = vmatprep.subr.bf16.mxu0 %v3102_v7 }
 0x34a   :  { %v573_v50 = vsel %vm521_vm11, %v2916_v48, 0.0 }
 0x34b   :  { %v2918_v51 = vpop.eup %2917  ;;  %2927 = vpow2.f32 %v568_v49  ;;  %574 = vadd.xlane.f32.xlu1 %v573_v50  ;;  %v2824_v50 = vld [vmem:[#allocation2 + $0x18] sm:$0xff]  }
 0x34c   :  { %v576_v52 = vsel %vm521_vm11, %v2918_v51, 0.0  ;;  %2603 = vmatpush3.bf16.msra.mxu0 %v2822_v14 }
 0x34d   :  { %v2920_v54 = vpop.eup %2919  ;;  %577 = vadd.xlane.f32.xlu0 %v576_v52  ;;  %2604 = vmatprep.subr.bf16.mxu0 %v3102_v7  ;;  %v2826_v52 = vld [vmem:[#allocation2 + $0x28] sm:$0xff]  }
 0x34e   :  { %v579_v55 = vsel %vm521_vm11, %v2920_v54, 0.0 }
 0x34f   :  { %v2922_v59 = vpop.eup %2921  ;;  %580 = vadd.xlane.f32.xlu1 %v579_v55  ;;  %v2828_v55 = vld [vmem:[#allocation2 + $0x38] sm:$0xff]  }
 0x350   :  { %v582_v63 = vsel %vm521_vm11, %v2922_v59, 0.0  ;;  %2605 = vmatpush3.bf16.msra.mxu0 %v2823_v15 }
 0x351   :  { %v2924_v2 = vpop.eup %2923  ;;  %583 = vadd.xlane.f32.xlu0 %v582_v63  ;;  %2606 = vmatprep.subr.bf16.mxu0 %v3102_v7 }
 0x352   :  { %v585_v3 = vsel %vm521_vm11, %v2924_v2, 0.0 }
 0x353   :  { %v2926_v5 = vpop.eup %2925  ;;  %586 = vadd.xlane.f32.xlu1 %v585_v3 }
 0x354   :  { %v588_v6 = vsel %vm521_vm11, %v2926_v5, 0.0  ;;  %2607 = vmatpush3.bf16.msra.mxu0 %v2824_v50  ;;  %v2836_v50 = vld [vmem:[#allocation5 + $0x38] sm:$0xff]  }
 0x355   :  { %v2928_v9 = vpop.eup %2927  ;;  %589 = vadd.xlane.f32.xlu0 %v588_v6  ;;  %2608 = vmatprep.subr.bf16.mxu0 %v3102_v7 }
 0x356   :  { %v591_v10 = vsel %vm521_vm11, %v2928_v9, 0.0 }
 0x357   :  { %592 = vadd.xlane.f32.xlu1 %v591_v10 }
 0x3d6   :  { %v572_v17 = vpop.xlane.xlu0 %571 }
 0x3d7   :  { %2929 = vrcp.f32 %v572_v17 }
 0x3d8   :  { %v575_v18 = vpop.xlane.xlu1 %574 }
 0x3d9   :  { %2931 = vrcp.f32 %v575_v18 }
 0x3da   :  { %v578_v19 = vpop.xlane.xlu0 %577 }
 0x3db   :  { %2933 = vrcp.f32 %v578_v19 }
 0x3dc   :  { %v581_v20 = vpop.xlane.xlu1 %580 }
 0x3dd   :  { %2935 = vrcp.f32 %v581_v20 }
 0x3de   :  { %v584_v21 = vpop.xlane.xlu0 %583 }
 0x3df   :  { %2937 = vrcp.f32 %v584_v21 }
 0x3e0   :  { %v587_v22 = vpop.xlane.xlu1 %586 }
 0x3e1   :  { %v2930_v23 = vpop.eup %2929  ;;  %2939 = vrcp.f32 %v587_v22 }
 0x3e2   :  { %v590_v24 = vpop.xlane.xlu0 %589  ;;  %v602_v28 = vmul.f32 %v2930_v23, %v2914_v42 }
 0x3e3   :  { %v2932_v25 = vpop.eup %2931  ;;  %2941 = vrcp.f32 %v590_v24 }
 0x3e4   :  { %v593_v27 = vpop.xlane.xlu1 %592  ;;  %v603_v29 = vmul.f32 %v2932_v25, %v2916_v48 }
 0x3e5   :  { %v2934_v30 = vpop.eup %2933  ;;  %2943 = vrcp.f32 %v593_v27 }
 0x3e6   :  { %v610_v31 = vpack.c.bf16 %v603_v29, %v602_v28  ;;  %v604_v33 = vmul.f32 %v2934_v30, %v2918_v51  ;;  %v2825_v51 = vld [vmem:[#allocation2 + $0x20] sm:$0xff]  }
 0x3e7   :  { %v2936_v32 = vpop.eup %2935  ;;  %2609 = vmatpush3.bf16.msra.mxu0 %v2825_v51  ;;  %v2320_v30 = vld [vmem:[%s3804_s7] ss:$0 sm:$0xff] }
 0x3e8   :  { %v605_v34 = vmul.f32 %v2936_v32, %v2920_v54  ;;  %2592 = vmatprep.mubr.msk.bf16.mxu1 %vm521_vm11, %v610_v31  ;;  %2610 = vmatprep.subr.bf16.mxu0 %v3102_v7  ;;  %v2827_v54 = vld [vmem:[#allocation2 + $0x30] sm:$0xff]  }
 0x3e9   :  { %v2938_v35 = vpop.eup %2937 }
 0x3ea   :  { %v611_v36 = vpack.c.bf16 %v605_v34, %v604_v33  ;;  %v606_v38 = vmul.f32 %v2938_v35, %v2922_v59 }
 0x3eb   :  { %v2940_v37 = vpop.eup %2939  ;;  %2611 = vmatpush3.bf16.msra.mxu0 %v2826_v52 }
 0x3ec   :  { %2593 = vmatmul.mubr.msk.bf16.vlgmr.msra.gmra.mrb[4].mxu1 %vm521_vm11, %v611_v36  ;;  %v607_v40 = vmul.f32 %v2940_v37, %v2924_v2  ;;  %2612 = vmatprep.subr.bf16.mxu0 %v3102_v7 }
 0x3ed   :  { %v2942_v44 = vpop.eup %2941 }
 0x3ee   :  { %v612_v45 = vpack.c.bf16 %v607_v40, %v606_v38  ;;  %v608_v42 = vmul.f32 %v2942_v44, %v2926_v5 }
 0x3ef   :  { %v2944_v47 = vpop.eup %2943  ;;  %2613 = vmatpush3.bf16.msra.mxu0 %v2827_v54 }
 0x3f0   :  { %2596 = vmatprep.mubr.msk.bf16.mxu1 %vm521_vm11, %v612_v45  ;;  %v609_v48 = vmul.f32 %v2944_v47, %v2928_v9  ;;  %2614 = vmatprep.subr.bf16.mxu0 %v3102_v7  ;;  %v2829_v45 = vld [vmem:[#allocation5] sm:$0xff]   ;;  %v2830_v47 = vld [vmem:[#allocation5 + $0x8] sm:$0xff]  }
 0x3f1   :  { %2621 = vmatpush3.bf16.msra.mxu1 %v2829_v45 }
 0x3f2   :  { %v613_v49 = vpack.c.bf16 %v609_v48, %v608_v42  ;;  %2622 = vmatprep.subr.bf16.mxu1 %v3102_v7  ;;  %v2831_v42 = vld [vmem:[#allocation5 + $0x10] sm:$0xff]   ;;  %v2834_v48 = vld [vmem:[#allocation5 + $0x28] sm:$0xff]  }
 0x3f3   :  { %2615 = vmatpush3.bf16.msra.mxu0 %v2828_v55 }
 0x3f4   :  { %2597 = vmatmul.mubr.msk.bf16.gmra.mrb[8].mxu1 %vm521_vm11, %v613_v49  ;;  %2640 = vmatprep.subr.bf16.mxu0 %v3102_v7  ;;  %v2835_v49 = vld [vmem:[#allocation5 + $0x30] sm:$0xff]  }
 0x3f5   :  { %2636 = vmatprep.mubr.msk.bf16.mxu1 %vm3104_vm0, %v3102_v7  ;;  %2623 = vmatpush3.bf16.msra.mxu1 %v2830_v47 }
 0x3f6   :  { %2624 = vmatprep.subr.bf16.mxu1 %v3102_v7 }
 0x3f9   :  { %2625 = vmatpush3.bf16.msra.mxu1 %v2831_v42 }
 0x3fa   :  { %2626 = vmatprep.subr.bf16.mxu1 %v3102_v7 }
 0x4bf   :  { %v2594_v59 = vpop.f32.mrb[4].mxu1 }
 0x4c0   :  { %v695_v63 = vmul.f32 %v2594_v59, %v3381_v8  ;;  %v660_v2 = vpop.f32.mrb[5].mxu1 }
 0x4c1   :  { %v691_v3 = vmul.f32 %v3384_v12, %v660_v2  ;;  %v2595_v5 = vpop.f32.mrb[6].mxu1 }
 0x4c2   :  { %v696_v6 = vmul.f32 %v2595_v5, %v3381_v8  ;;  %v663_v9 = vpop.f32.mrb[7].mxu1 }
 0x4c3   :  { %v697_v10 = vadd.f32 %v695_v63, %v691_v3  ;;  %v692_v11 = vmul.f32 %v3384_v12, %v663_v9 }
 0x4c5   :  { %v698_v14 = vadd.f32 %v696_v6, %v692_v11 }
 0x4c7   :  { %v2598_v15 = vpop.f32.mrb[8].mxu1 }
 0x4c8   :  { %v676_v17 = vpop.f32.mrb[9].mxu1  ;;  %v703_v21 = vmul.f32 %v2598_v15, %v3390_v16 }
 0x4c9   :  { %v699_v18 = vmul.f32 %v3387_v13, %v676_v17  ;;  %v2599_v19 = vpop.f32.mrb[10].mxu1 }
 0x4ca   :  { %v679_v20 = vpop.f32.mrb[11].mxu1  ;;  %v704_v25 = vmul.f32 %v2599_v19, %v3390_v16 }
 0x4cb   :  { %v701_v22 = vadd.f32 %v699_v18, %v697_v10  ;;  %v700_v23 = vmul.f32 %v3387_v13, %v679_v20  ;;  %v2329_v20 = vld [vmem:[%s3805_s8] ss:$0 sm:$0xff] }
 0x4cd   :  { %v705_v24 = vadd.f32 %v703_v21, %v701_v22  ;;  %v702_v27 = vadd.f32 %v700_v23, %v698_v14 }
 0x4cf   :  { %v706_v28 = vadd.f32 %v704_v25, %v702_v27  ;;  %v2330_v27 = vld [vmem:[%s3806_s9] ss:$0 sm:$0xff] }
 0x4d1   :  { %v707_v29 = vpack.c.bf16 %v706_v28, %v705_v24 }
 0x4d3   :  { %2617 = vmatmul.mubr.bf16.vlgmr.msra.gmra.mrb[12].mxu0 %v707_v29 }
 0x4d4   :  { %2656 = vmatprep.mubr.msk.bf16.mxu0 %vm3104_vm0, %v3102_v7 }
 0x5a6   :  { %v813_v31 = vpop.f32.mrb[12].mxu0 }
 0x5a7   :  { %v814_v32 = vadd.f32 %v2320_v30, %v813_v31  ;;  %v2618_v33 = vpop.f32.mrb[13].mxu0 }
 0x5a8   :  { %v816_v34 = vpop.f32.mrb[14].mxu0  ;;  %v2838_v33 = vld [vmem:[#allocation7 + $0x8] sm:$0xff]  }
 0x5a9   :  { %v820_v35 = vadd.f32 %v814_v32, %v3360_v56  ;;  %v817_v36 = vadd.f32 %v2320_v30, %v816_v34  ;;  %v2619_v37 = vpop.f32.mrb[15].mxu0  ;;  %v2832_v56 = vld [vmem:[#allocation5 + $0x18] sm:$0xff]   ;;  %v2837_v32 = vld [vmem:[#allocation7] sm:$0xff]   ;;  %v2839_v34 = vld [vmem:[#allocation7 + $0x10] sm:$0xff]  }
 0x5aa   :  { %2627 = vmatpush3.bf16.msra.mxu1 %v2832_v56  ;;  %2641 = vmatpush3.bf16.msra.mxu0 %v2837_v32  ;;  %v2842_v37 = vld [vmem:[#allocation7 + $0x28] sm:$0xff]  }
 0x5ab   :  { %v821_v38 = vadd.f32 %v817_v36, %v3362_v57  ;;  %824 = vadd.xlane.f32.xlu0 %v820_v35  ;;  %v830_v40 = vmul.f32 %v820_v35, %v820_v35  ;;  %2628 = vmatprep.subr.bf16.mxu1 %v3102_v7  ;;  %v2833_v57 = vld [vmem:[#allocation5 + $0x20] sm:$0xff]   ;;  %v2848_v32 = vld [vmem:[%s3801_s4 + $0xc8] ss:$12 sps:$4 sm:$0xff]  }
 0x5ac   :  { %2642 = vmatprep.subr.bf16.mxu0 %v3102_v7  ;;  %v2841_v36 = vld [vmem:[#allocation7 + $0x20] sm:$0xff]  }
 0x5ad   :  { %826 = vadd.xlane.f32.xlu1 %v821_v38  ;;  %v831_v44 = vmul.f32 %v821_v38, %v821_v38 }
 0x5ae   :  { %2629 = vmatpush3.bf16.msra.mxu1 %v2833_v57  ;;  %2643 = vmatpush3.bf16.msra.mxu0 %v2838_v33  ;;  %v2851_v33 = vld [vmem:[%s3801_s4 + $0xdc] ss:$12 sps:$4 sm:$0xff]  }
 0x5af   :  { %832 = vadd.xlane.f32.xlu0 %v830_v40  ;;  %2630 = vmatprep.subr.bf16.mxu1 %v3102_v7  ;;  %v2331_v40 = vld [vmem:[%s3808_s11] ss:$0 sm:$0xff] }
 0x5b0   :  { %2644 = vmatprep.subr.bf16.mxu0 %v3102_v7 }
 0x5b1   :  { %834 = vadd.xlane.f32.xlu1 %v831_v44 }
 0x5b2   :  { %2631 = vmatpush3.bf16.msra.mxu1 %v2834_v48  ;;  %2645 = vmatpush3.bf16.msra.mxu0 %v2839_v34  ;;  %v2849_v34 = vld [vmem:[%s3801_s4 + $0xd8] ss:$12 sps:$4 sm:$0xff]  }
 0x5b3   :  { %2632 = vmatprep.subr.bf16.mxu1 %v3102_v7  ;;  %2646 = vmatprep.subr.bf16.mxu0 %v3102_v7 }
 0x5b6   :  { %2633 = vmatpush3.bf16.msra.mxu1 %v2835_v49 }
 0x5b7   :  { %2634 = vmatprep.subr.bf16.mxu1 %v3102_v7 }
 0x5ba   :  { %2635 = vmatpush3.bf16.msra.mxu1 %v2836_v50 }
 0x638   :  { %v825_v51 = vpop.xlane.xlu0 %824 }
 0x639   :  { %v828_v52 = vmul.f32 0.03125, %v825_v51 }
 0x63a   :  { %v827_v54 = vpop.xlane.xlu1 %826 }
 0x63b   :  { %v829_v55 = vmul.f32 0.03125, %v827_v54  ;;  %v838_v63 = vmul.f32 %v828_v52, %v828_v52  ;;  %v844_v18 = vsub.f32 %v820_v35, %v828_v52  ;;  %v2840_v35 = vld [vmem:[#allocation7 + $0x18] sm:$0xff]  }
 0x63c   :  { %v833_v59 = vpop.xlane.xlu0 %832  ;;  %2647 = vmatpush3.bf16.msra.mxu0 %v2840_v35  ;;  %v2852_v35 = vld [vmem:[%s3801_s4 + $0xe0] ss:$12 sps:$4 sm:$0xff]  }
 0x63d   :  { %v836_v2 = vmul.f32 0.03125, %v833_v59  ;;  %v839_v5 = vmul.f32 %v829_v55, %v829_v55  ;;  %v845_v21 = vsub.f32 %v821_v38, %v829_v55  ;;  %2648 = vmatprep.subr.bf16.mxu0 %v3102_v7  ;;  %v2844_v38 = vld [vmem:[#allocation7 + $0x38] sm:$0xff]  }
 0x63e   :  { %v835_v3 = vpop.xlane.xlu1 %834 }
 0x63f   :  { %v840_v6 = vsub.f32 %v836_v2, %v838_v63  ;;  %v837_v9 = vmul.f32 0.03125, %v835_v3 }
 0x640   :  { %2649 = vmatpush3.bf16.msra.mxu0 %v2841_v36  ;;  %v2855_v36 = vld [vmem:[%s3801_s4 + $0xf4] ss:$12 sps:$4 sm:$0xff]  }
 0x641   :  { %v842_v10 = vmax.f32 %v840_v6, 0.0  ;;  %v841_v11 = vsub.f32 %v837_v9, %v839_v5  ;;  %2650 = vmatprep.subr.bf16.mxu0 %v3102_v7 }
 0x643   :  { %v846_v14 = vadd.f32 1e-12, %v842_v10  ;;  %v843_v15 = vmax.f32 %v841_v11, 0.0 }
 0x644   :  { %2651 = vmatpush3.bf16.msra.mxu0 %v2842_v37  ;;  %v2853_v37 = vld [vmem:[%s3801_s4 + $0xf0] ss:$12 sps:$4 sm:$0xff]  }
 0x645   :  { %2945 = vrsqrt.f32 %v846_v14  ;;  %v847_v17 = vadd.f32 1e-12, %v843_v15  ;;  %2652 = vmatprep.subr.bf16.mxu0 %v3102_v7 }
 0x647   :  { %2947 = vrsqrt.f32 %v847_v17 }
 0x64f   :  { %v2946_v19 = vpop.eup %2945 }
 0x650   :  { %v850_v22 = vmul.f32 %v2946_v19, %v844_v18  ;;  %v2340_v18 = vld [vmem:[%s3810_s13] ss:$0 sm:$0xff] }
 0x651   :  { %v2948_v23 = vpop.eup %2947 }
 0x652   :  { %v851_v24 = vmul.f32 %v2948_v23, %v845_v21  ;;  %v858_v25 = vmul.f32 %v2329_v20, %v850_v22 }
 0x654   :  { %v859_v28 = vmul.f32 %v2329_v20, %v851_v24  ;;  %v3510_v29 = vadd.f32 %v2330_v27, %v858_v25 }
 0x656   :  { %v3512_v30 = vadd.f32 %v2330_v27, %v859_v28 }
 0x658   :  { %v868_v31 = vpack.c.bf16 %v3512_v30, %v3510_v29 }
 0x65a   :  { %2637 = vmatmul.mubr.bf16.vlgmr.msra.gmra.mrb[12].mxu1 %v868_v31 }
 0x65b   :  { %1372 = vmatprep.mubr.bf16.mxu1 %v3103_v26  ;;  %v2843_v26 = vld [vmem:[#allocation7 + $0x30] sm:$0xff]  }
 0x65c   :  { %2653 = vmatpush3.bf16.msra.mxu0 %v2843_v26  ;;  %v2856_v26 = vld [vmem:[%s3801_s4 + $0xf8] ss:$12 sps:$4 sm:$0xff]  }
 0x65d   :  { %2654 = vmatprep.subr.bf16.mxu0 %v3102_v7 }
 0x660   :  { %2655 = vmatpush3.bf16.msra.mxu0 %v2844_v38  ;;  %v2859_v38 = vld [vmem:[%s3801_s4 + $0x10c] ss:$12 sps:$4 sm:$0xff]  }
 0x661   :  { %2660 = vmatprep.subr.bf16.mxu0 %v3102_v7 }
 0x72d   :  { %v974_v44 = vpop.f32.mrb[12].mxu1 }
 0x72e   :  { %v975_v45 = vadd.f32 %v2331_v40, %v974_v44  ;;  %v2638_v47 = vpop.f32.mrb[13].mxu1  ;;  %v2860_v44 = vld [vmem:[%s3801_s4 + $0x110] ss:$12 sps:$4 sm:$0xff]  }
 0x72f   :  { %v977_v42 = vpop.f32.mrb[14].mxu1  ;;  %v2861_v47 = vld [vmem:[%s3801_s4 + $0x120] ss:$12 sps:$4 sm:$0xff]  }
 0x730   :  { %v983_v56 = vmul.f32 0.044715, %v975_v45  ;;  %v978_v57 = vadd.f32 %v2331_v40, %v977_v42  ;;  %v2639_v48 = vpop.f32.mrb[15].mxu1  ;;  %v981_v9 = vmul.f32 0.5, %v975_v45  ;;  %v2857_v40 = vld [vmem:[%s3801_s4 + $0x108] ss:$12 sps:$4 sm:$0xff]  }
 0x731   :  { %v2864_v42 = vld [vmem:[%s3801_s4 + $0x128] ss:$12 sps:$4 sm:$0xff]   ;;  %v2868_v48 = vld [vmem:[%s3801_s4 + $0x140] ss:$12 sps:$4 sm:$0xff]  }
 0x732   :  { %v985_v49 = vmul.f32 %v983_v56, %v975_v45  ;;  %v984_v50 = vmul.f32 0.044715, %v978_v57  ;;  %v982_v10 = vmul.f32 0.5, %v978_v57  ;;  %v2867_v56 = vld [vmem:[%s3801_s4 + $0x13c] ss:$12 sps:$4 sm:$0xff]  }
 0x734   :  { %v987_v51 = vmul.f32 %v985_v49, %v975_v45  ;;  %v986_v52 = vmul.f32 %v984_v50, %v978_v57  ;;  %v2871_v49 = vld [vmem:[%s3801_s4 + $0x154] ss:$12 sps:$4 sm:$0xff]   ;;  %v2869_v50 = vld [vmem:[%s3801_s4 + $0x150] ss:$12 sps:$4 sm:$0xff]  }
 0x736   :  { %v989_v54 = vadd.f32 %v987_v51, %v975_v45  ;;  %v988_v55 = vmul.f32 %v986_v52, %v978_v57  ;;  %v2863_v45 = vld [vmem:[%s3801_s4 + $0x124] ss:$12 sps:$4 sm:$0xff]   ;;  %v2875_v52 = vld [vmem:[%s3801_s4 + $0x16c] ss:$12 sps:$4 sm:$0xff]  }
 0x737   :  { %v2872_v51 = vld [vmem:[%s3801_s4 + $0x158] ss:$12 sps:$4 sm:$0xff]  }
 0x738   :  { %v991_v59 = vmul.f32 0.7978846, %v989_v54  ;;  %v990_v63 = vadd.f32 %v988_v55, %v978_v57  ;;  %v2865_v57 = vld [vmem:[%s3801_s4 + $0x138] ss:$12 sps:$4 sm:$0xff]   ;;  %v2873_v54 = vld [vmem:[%s3801_s4 + $0x168] ss:$12 sps:$4 sm:$0xff]  }
 0x739   :  { %v2876_v55 = vld [vmem:[%s3801_s4 + $0x170] ss:$12 sps:$4 sm:$0xff]  }
 0x73a   :  { %2949 = vtanh.f32 %v991_v59  ;;  %v992_v2 = vmul.f32 0.7978846, %v990_v63 }
 0x73c   :  { %2951 = vtanh.f32 %v992_v2 }
 0x744   :  { %v2950_v3 = vpop.eup %2949 }
 0x745   :  { %v995_v5 = vadd.f32 1.0, %v2950_v3 }
 0x746   :  { %v2952_v6 = vpop.eup %2951 }
 0x747   :  { %v996_v11 = vadd.f32 1.0, %v2952_v6  ;;  %v997_v14 = vmul.f32 %v995_v5, %v981_v9 }
 0x749   :  { %v998_v15 = vmul.f32 %v996_v11, %v982_v10 }
 0x74b   :  { %v999_v17 = vpack.c.bf16 %v998_v15, %v997_v14 }
 0x74d   :  { %2657 = vmatmul.mubr.bf16.vlgmr.msra.gmra.mrb[16].mxu0 %v999_v17 }
 0x74e   :  { %2676 = vmatprep.mubr.msk.bf16.mxu0 %vm3104_vm0, %v3102_v7  ;;  %2661 = vmatpush3.bf16.msra.mxu0 %v2848_v32 }
 0x74f   :  { %2662 = vmatprep.subr.bf16.mxu0 %v3102_v7 }
 0x752   :  { %2663 = vmatpush3.bf16.msra.mxu0 %v2852_v35 }
 0x753   :  { %2664 = vmatprep.subr.bf16.mxu0 %v3102_v7 }
 0x756   :  { %2665 = vmatpush3.bf16.msra.mxu0 %v2856_v26 }
 0x757   :  { %2666 = vmatprep.subr.bf16.mxu0 %v3102_v7 }
 0x75a   :  { %2667 = vmatpush3.bf16.msra.mxu0 %v2860_v44 }
 0x75b   :  { %2668 = vmatprep.subr.bf16.mxu0 %v3102_v7 }
 0x75e   :  { %2669 = vmatpush3.bf16.msra.mxu0 %v2864_v42 }
 0x75f   :  { %2670 = vmatprep.subr.bf16.mxu0 %v3102_v7 }
 0x762   :  { %2671 = vmatpush3.bf16.msra.mxu0 %v2868_v48 }
 0x763   :  { %2672 = vmatprep.subr.bf16.mxu0 %v3102_v7 }
 0x766   :  { %2673 = vmatpush3.bf16.msra.mxu0 %v2872_v51 }
 0x767   :  { %2674 = vmatprep.subr.bf16.mxu0 %v3102_v7 }
 0x76a   :  { %2675 = vmatpush3.bf16.msra.mxu0 %v2876_v55 }
 0x76b   :  { %2720 = vmatprep.subr.bf16.mxu0 %v3102_v7 }
 0x820   :  { %v1105_v19 = vpop.f32.mrb[16].mxu0 }
 0x821   :  { %v1106_v20 = vadd.f32 %v2340_v18, %v1105_v19  ;;  %v2658_v21 = vpop.f32.mrb[17].mxu0 }
 0x822   :  { %v1108_v22 = vpop.f32.mrb[18].mxu0 }
 0x823   :  { %v3534_v23 = vadd.f32 %v1106_v20, %v3510_v29  ;;  %v1109_v24 = vadd.f32 %v2340_v18, %v1108_v22  ;;  %v2659_v25 = vpop.f32.mrb[19].mxu0  ;;  %v2847_v29 = vld [vmem:[%s3801_s4 + $0xc4] ss:$12 sps:$4 sm:$0xff]  }
 0x824   :  { %1340 = vmatprep.subr.bf16.mxu1 %v2847_v29  ;;  %v2349_v25 = vld [vmem:[%s3811_s14] ss:$0 sm:$0xff] }
 0x825   :  { %v3537_v27 = vadd.f32 %v1109_v24, %v3512_v30  ;;  %1116 = vadd.xlane.f32.xlu0 %v3534_v23  ;;  %v1122_v28 = vmul.f32 %v3534_v23, %v3534_v23  ;;  %v2845_v30 = vld [vmem:[%s3801_s4 + $0xc0] ss:$12 sps:$4 sm:$0xff]  }
 0x826   :  { %1341 = vmatpush1.bf16.msra.mxu1 %v2845_v30 }
 0x827   :  { %1118 = vadd.xlane.f32.xlu1 %v3537_v27  ;;  %v1123_v31 = vmul.f32 %v3537_v27, %v3537_v27  ;;  %1342 = vmatprep.subr.bf16.mxu1 %v2851_v33  ;;  %v2350_v33 = vld [vmem:[%s3812_s15] ss:$0 sm:$0xff] }
 0x829   :  { %1124 = vadd.xlane.f32.xlu0 %v1122_v28 }
 0x82a   :  { %1343 = vmatpush1.bf16.msra.mxu1 %v2849_v34 }
 0x82b   :  { %1126 = vadd.xlane.f32.xlu1 %v1123_v31  ;;  %1344 = vmatprep.subr.bf16.mxu1 %v2855_v36 }
 0x82e   :  { %1345 = vmatpush1.bf16.msra.mxu1 %v2853_v37 }
 0x82f   :  { %1346 = vmatprep.subr.bf16.mxu1 %v2859_v38 }
 0x832   :  { %1347 = vmatpush1.bf16.msra.mxu1 %v2857_v40 }
 0x833   :  { %1348 = vmatprep.subr.bf16.mxu1 %v2863_v45 }
 0x836   :  { %1349 = vmatpush1.bf16.msra.mxu1 %v2861_v47 }
 0x837   :  { %1350 = vmatprep.subr.bf16.mxu1 %v2867_v56 }
 0x83a   :  { %1351 = vmatpush1.bf16.msra.mxu1 %v2865_v57 }
 0x83b   :  { %1352 = vmatprep.subr.bf16.mxu1 %v2871_v49 }
 0x83e   :  { %1353 = vmatpush1.bf16.msra.mxu1 %v2869_v50 }
 0x83f   :  { %1354 = vmatprep.subr.bf16.mxu1 %v2875_v52 }
 0x842   :  { %1355 = vmatpush1.bf16.msra.mxu1 %v2873_v54 }
 0x8b2   :  { %v1117_v59 = vpop.xlane.xlu0 %1116 }
 0x8b3   :  { %v1120_v63 = vmul.f32 0.03125, %v1117_v59 }
 0x8b4   :  { %v1119_v2 = vpop.xlane.xlu1 %1118 }
 0x8b5   :  { %v1121_v3 = vmul.f32 0.03125, %v1119_v2  ;;  %v1130_v6 = vmul.f32 %v1120_v63, %v1120_v63  ;;  %v1136_v22 = vsub.f32 %v3534_v23, %v1120_v63 }
 0x8b6   :  { %v1125_v5 = vpop.xlane.xlu0 %1124 }
 0x8b7   :  { %v1128_v9 = vmul.f32 0.03125, %v1125_v5  ;;  %v1131_v11 = vmul.f32 %v1121_v3, %v1121_v3  ;;  %v1137_v28 = vsub.f32 %v3537_v27, %v1121_v3  ;;  %v2383_v27 = vld [vmem:[%s3802_s5 + $0x3] sm:$0x7] }
 0x8b8   :  { %v1127_v10 = vpop.xlane.xlu1 %1126  ;;  %v1200_v37 = vrot.slane %v2383_v27, %v217_v62  ;;  %v1208_v26 = vrot.slane %v2383_v27, %v225_v0  ;;  %v1204_v38 = vrot.slane %v2383_v27, %v221_v1 }
 0x8b9   :  { %v1132_v14 = vsub.f32 %v1128_v9, %v1130_v6  ;;  %v1129_v15 = vmul.f32 0.03125, %v1127_v10 }
 0x8bb   :  { %v1134_v17 = vmax.f32 %v1132_v14, 0.0  ;;  %v1133_v18 = vsub.f32 %v1129_v15, %v1131_v11 }
 0x8bd   :  { %v1138_v19 = vadd.f32 1e-12, %v1134_v17  ;;  %v1135_v20 = vmax.f32 %v1133_v18, 0.0 }
 0x8bf   :  { %2953 = vrsqrt.f32 %v1138_v19  ;;  %v1139_v21 = vadd.f32 1e-12, %v1135_v20 }
 0x8c1   :  { %2955 = vrsqrt.f32 %v1139_v21 }
 0x8c9   :  { %v2954_v24 = vpop.eup %2953 }
 0x8ca   :  { %v1142_v31 = vmul.f32 %v2954_v24, %v1136_v22 }
 0x8cb   :  { %v2956_v29 = vpop.eup %2955 }
 0x8cc   :  { %v1143_v30 = vmul.f32 %v2956_v29, %v1137_v28  ;;  %v1150_v32 = vmul.f32 %v2349_v25, %v1142_v31 }
 0x8ce   :  { %v1151_v34 = vmul.f32 %v2349_v25, %v1143_v30  ;;  %v3633_v35 = vadd.f32 %v2350_v33, %v1150_v32 }
 0x8d0   :  { %v3635_v36 = vadd.f32 %v2350_v33, %v1151_v34 }
 0x8d2   :  { %v1160_v23 = vpack.c.bf16 %v3635_v36, %v3633_v35 }
 0x8d4   :  { %1373 = vmatmul.mubr.bf16.vlgmr.msra.gmra.mrb[16].mxu1 %v1160_v23  ;;  %2677 = vmatmul.mubr.bf16.vlgmr.msra.gmra.mrb[20].mxu0 %v1160_v23 }
 0x8d5   :  { %2736 = vmatprep.mubr.msk.bf16.mxu0 %vm3104_vm0, %v3102_v7 }
 0x9a7   :  { %v1374_v40 = vpop.f32.mrb[16].mxu1  ;;  %v1417_v44 = vpop.f32.mrb[20].mxu0 }
 0x9a8   :  { %v1375_v45 = vadd.f32 %v1374_v40, %v1200_v37  ;;  %v1376_v47 = vpop.f32.mrb[17].mxu1  ;;  %v2678_v42 = vpop.f32.mrb[21].mxu0  ;;  %v1418_v48 = vadd.f32 %v1417_v44, %v1208_v26 }
 0x9a9   :  { %v1378_v56 = vpop.f32.mrb[18].mxu1  ;;  %v1420_v57 = vpop.f32.mrb[22].mxu0  ;;  %v1377_v49 = vadd.f32 %v1376_v47, %v1204_v38 }
 0x9aa   :  { %v1379_v50 = vadd.f32 %v1378_v56, %v1200_v37  ;;  %v1421_v51 = vadd.f32 %v1420_v57, %v1208_v26  ;;  %v1380_v52 = vpop.f32.mrb[19].mxu1  ;;  %v2679_v54 = vpop.f32.mrb[23].mxu0  ;;  %v1426_v62 = vmul.f32 %v3381_v8, %v1375_v45  ;;  %v1424_v0 = vmul.f32 %v3384_v12, %v1375_v45 }
 0x9ab   :  { %v1381_v55 = vadd.f32 %v1380_v52, %v1204_v38  ;;  %v1428_v60 = vmul.f32 %v3387_v13, %v1375_v45  ;;  %v1430_v5 = vmul.f32 %v3390_v16, %v1375_v45 }
 0x9ac   :  { %v1427_v1 = vmul.f32 %v3381_v8, %v1379_v50  ;;  %v1437_v59 = vpack.c.bf16 %v1421_v51, %v1418_v48  ;;  %v1425_v63 = vmul.f32 %v3384_v12, %v1379_v50  ;;  %v1429_v2 = vmul.f32 %v3387_v13, %v1379_v50 }
 0x9ad   :  { %v1436_v3 = vpack.c.bf16 %v1381_v55, %v1377_v49  ;;  %v1431_v6 = vmul.f32 %v3390_v16, %v1379_v50 }
 0x9ae   :  { %v1432_v9 = vpack.c.bf16 %v1425_v63, %v1424_v0  ;;  %v1433_v10 = vpack.c.bf16 %v1427_v1, %v1426_v62  ;;  %v1434_v11 = vpack.c.bf16 %v1429_v2, %v1428_v60 }
 0x9af   :  { %2680 = vmatprep.subr.bf16.mxu1 %v1436_v3  ;;  %v1435_v14 = vpack.c.bf16 %v1431_v6, %v1430_v5 }
 0x9b0   :  { %2681 = vmatpush3.bf16.xpose.msra.mxu1 %v1436_v3  ;;  %2682 = vmatprep.mubr.bf16.mxu1 %v1432_v9 }
 0x9b1   :  { %2690 = vmatprep.subr.bf16.mxu1 %v1437_v59 }
 0x9b7   :  { %2683 = vmatmul.mubr.bf16.vlgmr.msra.gmra.mrb[20].mxu1 %v1433_v10 }
 0x9b8   :  { %2686 = vmatprep.mubr.bf16.mxu1 %v1434_v11  ;;  %2691 = vmatpush3.bf16.msra.mxu1 %v1437_v59 }
 0x9b9   :  { %2700 = vmatprep.subr.bf16.mxu1 %v3102_v7 }
 0x9bf   :  { %2687 = vmatmul.mubr.bf16.gmra.mrb[24].mxu1 %v1435_v14 }
 0xa8a   :  { %v2684_v15 = vpop.f32.mrb[20].mxu1 }
 0xa8b   :  { %v1472_v17 = vpop.f32.mrb[21].mxu1  ;;  %v1481_v21 = vadd.f32 %v2684_v15, %v3412_v41 }
 0xa8c   :  { %v1473_v18 = vadd.f32 %v1472_v17, %v3407_v39  ;;  %v2685_v19 = vpop.f32.mrb[22].mxu1 }
 0xa8d   :  { %v1475_v20 = vpop.f32.mrb[23].mxu1  ;;  %v1484_v25 = vadd.f32 %v2685_v19, %v3423_v46  ;;  %v1509_v29 = vsel %vm521_vm11, %v1481_v21, -inf }
 0xa8e   :  { %v1476_v22 = vadd.f32 %v1475_v20, %v3417_v43  ;;  %v1503_v24 = vsel %vm521_vm11, %v1473_v18, -inf }
 0xa8f   :  { %1504 = vmax.xlane.f32.xlu0 %v1503_v24  ;;  %v1512_v41 = vsel %vm521_vm11, %v1484_v25, -inf }
 0xa90   :  { %v1506_v28 = vsel %vm521_vm11, %v1476_v22, -inf }
 0xa91   :  { %1507 = vmax.xlane.f32.xlu1 %v1506_v28 }
 0xa92   :  { %v2688_v31 = vpop.f32.mrb[24].mxu1 }
 0xa93   :  { %v1488_v30 = vpop.f32.mrb[25].mxu1  ;;  %1510 = vmax.xlane.f32.xlu0 %v1509_v29  ;;  %v1497_v43 = vadd.f32 %v2688_v31, %v3439_v58 }
 0xa94   :  { %v1489_v39 = vadd.f32 %v1488_v30, %v3433_v53  ;;  %v2689_v32 = vpop.f32.mrb[26].mxu1 }
 0xa95   :  { %v1491_v33 = vpop.f32.mrb[27].mxu1  ;;  %1513 = vmax.xlane.f32.xlu1 %v1512_v41  ;;  %v1500_v23 = vadd.f32 %v2689_v32, %v3451_v4  ;;  %v1521_v37 = vsel %vm521_vm11, %v1497_v43, -inf }
 0xa96   :  { %v1492_v34 = vadd.f32 %v1491_v33, %v3444_v61  ;;  %v1515_v46 = vsel %vm521_vm11, %v1489_v39, -inf }
 0xa97   :  { %1516 = vmax.xlane.f32.xlu0 %v1515_v46  ;;  %v1524_v53 = vsel %vm521_vm11, %v1500_v23, -inf }
 0xa98   :  { %v1518_v27 = vsel %vm521_vm11, %v1492_v34, -inf }
 0xa99   :  { %1519 = vmax.xlane.f32.xlu1 %v1518_v27 }
 0xa9b   :  { %1522 = vmax.xlane.f32.xlu0 %v1521_v37 }
 0xa9d   :  { %1525 = vmax.xlane.f32.xlu1 %v1524_v53 }
 0xb1c   :  { %v1505_v26 = vpop.xlane.xlu0 %1504 }
 0xb1d   :  { %v1527_v38 = vsub.f32 %v1473_v18, %v1505_v26 }
 0xb1e   :  { %v1508_v40 = vpop.xlane.xlu1 %1507 }
 0xb1f   :  { %v1535_v58 = vmul.f32 1.442695, %v1527_v38  ;;  %v1528_v44 = vsub.f32 %v1476_v22, %v1508_v40  ;;  %v2877_v38 = vld [vmem:[#allocation2 + $0x40] sm:$0xff]  }
 0xb20   :  { %v1511_v61 = vpop.xlane.xlu0 %1510 }
 0xb21   :  { %2957 = vpow2.f32 %v1535_v58  ;;  %v1537_v45 = vmul.f32 1.442695, %v1528_v44  ;;  %v1529_v47 = vsub.f32 %v1481_v21, %v1511_v61 }
 0xb22   :  { %v1514_v42 = vpop.xlane.xlu1 %1513 }
 0xb23   :  { %2959 = vpow2.f32 %v1537_v45  ;;  %v1539_v4 = vmul.f32 1.442695, %v1529_v47  ;;  %v1530_v56 = vsub.f32 %v1484_v25, %v1514_v42  ;;  %v2878_v47 = vld [vmem:[#allocation2 + $0x48] sm:$0xff]  }
 0xb24   :  { %v1517_v57 = vpop.xlane.xlu0 %1516 }
 0xb25   :  { %2961 = vpow2.f32 %v1539_v4  ;;  %v1541_v48 = vmul.f32 1.442695, %v1530_v56  ;;  %v1531_v49 = vsub.f32 %v1489_v39, %v1517_v57 }
 0xb26   :  { %v1520_v50 = vpop.xlane.xlu1 %1519 }
 0xb27   :  { %2963 = vpow2.f32 %v1541_v48  ;;  %v1543_v51 = vmul.f32 1.442695, %v1531_v49  ;;  %v1532_v52 = vsub.f32 %v1492_v34, %v1520_v50  ;;  %v2879_v48 = vld [vmem:[#allocation2 + $0x50] sm:$0xff]   ;;  %v2880_v50 = vld [vmem:[#allocation2 + $0x58] sm:$0xff]  }
 0xb28   :  { %v1523_v54 = vpop.xlane.xlu0 %1522 }
 0xb29   :  { %2965 = vpow2.f32 %v1543_v51  ;;  %v1545_v62 = vmul.f32 1.442695, %v1532_v52  ;;  %v1533_v55 = vsub.f32 %v1497_v43, %v1523_v54  ;;  %v2881_v51 = vld [vmem:[#allocation2 + $0x60] sm:$0xff]   ;;  %v2882_v52 = vld [vmem:[#allocation2 + $0x68] sm:$0xff]   ;;  %v2883_v54 = vld [vmem:[#allocation2 + $0x70] sm:$0xff]  }
 0xb2a   :  { %v1526_v0 = vpop.xlane.xlu1 %1525 }
 0xb2b   :  { %v2958_v60 = vpop.eup %2957  ;;  %2967 = vpow2.f32 %v1545_v62  ;;  %v1547_v1 = vmul.f32 1.442695, %v1533_v55  ;;  %v1534_v59 = vsub.f32 %v1500_v23, %v1526_v0  ;;  %v2884_v62 = vld [vmem:[#allocation2 + $0x78] sm:$0xff]  }
 0xb2c   :  { %v1551_v63 = vsel %vm521_vm11, %v2958_v60, 0.0 }
 0xb2d   :  { %v2960_v2 = vpop.eup %2959  ;;  %2969 = vpow2.f32 %v1547_v1  ;;  %v1549_v3 = vmul.f32 1.442695, %v1534_v59  ;;  %1552 = vadd.xlane.f32.xlu0 %v1551_v63 }
 0xb2e   :  { %v1554_v5 = vsel %vm521_vm11, %v2960_v2, 0.0 }
 0xb2f   :  { %v2962_v6 = vpop.eup %2961  ;;  %2971 = vpow2.f32 %v1549_v3  ;;  %1555 = vadd.xlane.f32.xlu1 %v1554_v5 }
 0xb30   :  { %v1557_v9 = vsel %vm521_vm11, %v2962_v6, 0.0 }
 0xb31   :  { %v2964_v10 = vpop.eup %2963  ;;  %1558 = vadd.xlane.f32.xlu0 %v1557_v9 }
 0xb32   :  { %v1560_v11 = vsel %vm521_vm11, %v2964_v10, 0.0 }
 0xb33   :  { %v2966_v14 = vpop.eup %2965  ;;  %1561 = vadd.xlane.f32.xlu1 %v1560_v11 }
 0xb34   :  { %v1563_v15 = vsel %vm521_vm11, %v2966_v14, 0.0 }
 0xb35   :  { %v2968_v17 = vpop.eup %2967  ;;  %1564 = vadd.xlane.f32.xlu0 %v1563_v15 }
 0xb36   :  { %v1566_v18 = vsel %vm521_vm11, %v2968_v17, 0.0 }
 0xb37   :  { %v2970_v19 = vpop.eup %2969  ;;  %1567 = vadd.xlane.f32.xlu1 %v1566_v18 }
 0xb38   :  { %v1569_v20 = vsel %vm521_vm11, %v2970_v19, 0.0 }
 0xb39   :  { %v2972_v21 = vpop.eup %2971  ;;  %1570 = vadd.xlane.f32.xlu0 %v1569_v20 }
 0xb3a   :  { %v1572_v22 = vsel %vm521_vm11, %v2972_v21, 0.0 }
 0xb3b   :  { %1573 = vadd.xlane.f32.xlu1 %v1572_v22 }
 0xbba   :  { %v1553_v24 = vpop.xlane.xlu0 %1552 }
 0xbbb   :  { %2973 = vrcp.f32 %v1553_v24 }
 0xbbc   :  { %v1556_v25 = vpop.xlane.xlu1 %1555 }
 0xbbd   :  { %2975 = vrcp.f32 %v1556_v25 }
 0xbbe   :  { %v1559_v28 = vpop.xlane.xlu0 %1558 }
 0xbbf   :  { %2977 = vrcp.f32 %v1559_v28 }
 0xbc0   :  { %v1562_v31 = vpop.xlane.xlu1 %1561 }
 0xbc1   :  { %2979 = vrcp.f32 %v1562_v31 }
 0xbc2   :  { %v1565_v29 = vpop.xlane.xlu0 %1564 }
 0xbc3   :  { %2981 = vrcp.f32 %v1565_v29 }
 0xbc4   :  { %v1568_v30 = vpop.xlane.xlu1 %1567 }
 0xbc5   :  { %v2974_v39 = vpop.eup %2973  ;;  %2983 = vrcp.f32 %v1568_v30 }
 0xbc6   :  { %v1571_v32 = vpop.xlane.xlu0 %1570  ;;  %v1583_v43 = vmul.f32 %v2974_v39, %v2958_v60 }
 0xbc7   :  { %v2976_v41 = vpop.eup %2975  ;;  %2985 = vrcp.f32 %v1571_v32 }
 0xbc8   :  { %v1574_v33 = vpop.xlane.xlu1 %1573  ;;  %v1584_v34 = vmul.f32 %v2976_v41, %v2960_v2 }
 0xbc9   :  { %v2978_v46 = vpop.eup %2977  ;;  %2987 = vrcp.f32 %v1574_v33  ;;  %v2885_v33 = vld [vmem:[#allocation5 + $0x40] sm:$0xff]  }
 0xbca   :  { %v1591_v23 = vpack.c.bf16 %v1584_v34, %v1583_v43  ;;  %v1585_v37 = vmul.f32 %v2978_v46, %v2962_v6  ;;  %2721 = vmatpush3.bf16.msra.mxu0 %v2885_v33  ;;  %v2886_v43 = vld [vmem:[#allocation5 + $0x48] sm:$0xff]   ;;  %v2887_v34 = vld [vmem:[#allocation5 + $0x50] sm:$0xff]  }
 0xbcb   :  { %v2980_v27 = vpop.eup %2979  ;;  %2722 = vmatprep.subr.bf16.mxu0 %v3102_v7  ;;  %v2890_v46 = vld [vmem:[#allocation5 + $0x68] sm:$0xff]  }
 0xbcc   :  { %v1586_v53 = vmul.f32 %v2980_v27, %v2964_v10  ;;  %2692 = vmatprep.mubr.msk.bf16.mxu1 %vm521_vm11, %v1591_v23  ;;  %v2891_v23 = vld [vmem:[#allocation5 + $0x70] sm:$0xff]   ;;  %v2892_v27 = vld [vmem:[#allocation5 + $0x78] sm:$0xff]  }
 0xbcd   :  { %v2982_v26 = vpop.eup %2981 }
 0xbce   :  { %v1592_v40 = vpack.c.bf16 %v1586_v53, %v1585_v37  ;;  %v1587_v44 = vmul.f32 %v2982_v26, %v2966_v14  ;;  %2723 = vmatpush3.bf16.msra.mxu0 %v2886_v43 }
 0xbcf   :  { %v2984_v58 = vpop.eup %2983  ;;  %2724 = vmatprep.subr.bf16.mxu0 %v3102_v7 }
 0xbd0   :  { %2693 = vmatmul.mubr.msk.bf16.vlgmr.msra.gmra.mrb[28].mxu1 %vm521_vm11, %v1592_v40  ;;  %v1588_v61 = vmul.f32 %v2984_v58, %v2968_v17 }
 0xbd1   :  { %v2986_v45 = vpop.eup %2985  ;;  %2701 = vmatpush3.bf16.msra.mxu1 %v2877_v38 }
 0xbd2   :  { %v1593_v42 = vpack.c.bf16 %v1588_v61, %v1587_v44  ;;  %2702 = vmatprep.subr.bf16.mxu1 %v3102_v7  ;;  %v1589_v56 = vmul.f32 %v2986_v45, %v2970_v19  ;;  %2725 = vmatpush3.bf16.msra.mxu0 %v2887_v34 }
 0xbd3   :  { %v2988_v4 = vpop.eup %2987  ;;  %2726 = vmatprep.subr.bf16.mxu0 %v3102_v7 }
 0xbd4   :  { %2696 = vmatprep.mubr.msk.bf16.mxu1 %vm521_vm11, %v1593_v42  ;;  %v1590_v57 = vmul.f32 %v2988_v4, %v2972_v21 }
 0xbd5   :  { %2703 = vmatpush3.bf16.msra.mxu1 %v2878_v47 }
 0xbd6   :  { %v1594_v49 = vpack.c.bf16 %v1590_v57, %v1589_v56  ;;  %2704 = vmatprep.subr.bf16.mxu1 %v3102_v7 }
 0xbd8   :  { %2697 = vmatmul.mubr.msk.bf16.gmra.mrb[32].mxu1 %vm521_vm11, %v1594_v49 }
 0xbd9   :  { %2705 = vmatpush3.bf16.msra.mxu1 %v2879_v48  ;;  %2716 = vmatprep.mubr.msk.bf16.mxu1 %vm3104_vm0, %v3102_v7 }
 0xbda   :  { %2706 = vmatprep.subr.bf16.mxu1 %v3102_v7 }
 0xbdd   :  { %2707 = vmatpush3.bf16.msra.mxu1 %v2880_v50 }
 0xbde   :  { %2708 = vmatprep.subr.bf16.mxu1 %v3102_v7 }
 0xbe1   :  { %2709 = vmatpush3.bf16.msra.mxu1 %v2881_v51 }
 0xbe2   :  { %2710 = vmatprep.subr.bf16.mxu1 %v3102_v7 }
 0xbe5   :  { %2711 = vmatpush3.bf16.msra.mxu1 %v2882_v52  ;;  %v2424_v52 = vld [vmem:[%s3805_s8 + $0x1] ss:$0 sm:$0xff] }
 0xbe6   :  { %2712 = vmatprep.subr.bf16.mxu1 %v3102_v7 }
 0xbe9   :  { %2713 = vmatpush3.bf16.msra.mxu1 %v2883_v54 }
 0xbea   :  { %2714 = vmatprep.subr.bf16.mxu1 %v3102_v7 }
 0xbed   :  { %2715 = vmatpush3.bf16.msra.mxu1 %v2884_v62 }
 0xbee   :  { %2740 = vmatprep.subr.bf16.mxu1 %v3102_v7 }
 0xca3   :  { %v2694_v55 = vpop.f32.mrb[28].mxu1 }
 0xca4   :  { %v1676_v0 = vmul.f32 %v2694_v55, %v3381_v8  ;;  %v1641_v60 = vpop.f32.mrb[29].mxu1 }
 0xca5   :  { %v1672_v1 = vmul.f32 %v3384_v12, %v1641_v60  ;;  %v2695_v59 = vpop.f32.mrb[30].mxu1 }
 0xca6   :  { %v1677_v63 = vmul.f32 %v2695_v59, %v3381_v8  ;;  %v1644_v2 = vpop.f32.mrb[31].mxu1 }
 0xca7   :  { %v1678_v3 = vadd.f32 %v1676_v0, %v1672_v1  ;;  %v1673_v5 = vmul.f32 %v3384_v12, %v1644_v2  ;;  %v2413_v12 = vld [vmem:[%s3804_s7 + $0x1] ss:$0 sm:$0xff] }
 0xca8   :  { %v2425_v1 = vld [vmem:[%s3806_s9 + $0x1] ss:$0 sm:$0xff] }
 0xca9   :  { %v1679_v6 = vadd.f32 %v1677_v63, %v1673_v5  ;;  %v2893_v5 = vld [vmem:[#allocation7 + $0x40] sm:$0xff]  }
 0xcab   :  { %v2698_v9 = vpop.f32.mrb[32].mxu1 }
 0xcac   :  { %v1657_v10 = vpop.f32.mrb[33].mxu1  ;;  %v1684_v17 = vmul.f32 %v2698_v9, %v3390_v16  ;;  %v2895_v9 = vld [vmem:[#allocation7 + $0x50] sm:$0xff]  }
 0xcad   :  { %v1680_v11 = vmul.f32 %v3387_v13, %v1657_v10  ;;  %v2699_v14 = vpop.f32.mrb[34].mxu1  ;;  %v2896_v10 = vld [vmem:[#allocation7 + $0x58] sm:$0xff]  }
 0xcae   :  { %v1660_v15 = vpop.f32.mrb[35].mxu1  ;;  %v1685_v21 = vmul.f32 %v2699_v14, %v3390_v16  ;;  %v2898_v14 = vld [vmem:[#allocation7 + $0x68] sm:$0xff]  }
 0xcaf   :  { %v1682_v18 = vadd.f32 %v1680_v11, %v1678_v3  ;;  %v1681_v19 = vmul.f32 %v3387_v13, %v1660_v15  ;;  %v2897_v11 = vld [vmem:[#allocation7 + $0x60] sm:$0xff]   ;;  %v2899_v15 = vld [vmem:[#allocation7 + $0x70] sm:$0xff]  }
 0xcb1   :  { %v1686_v20 = vadd.f32 %v1684_v17, %v1682_v18  ;;  %v1683_v8 = vadd.f32 %v1681_v19, %v1679_v6  ;;  %v2894_v6 = vld [vmem:[#allocation7 + $0x48] sm:$0xff]   ;;  %v2900_v17 = vld [vmem:[#allocation7 + $0x78] sm:$0xff]   ;;  %v2427_v18 = vld [vmem:[%s3808_s11 + $0x1] ss:$0 sm:$0xff] }
 0xcb3   :  { %v1687_v22 = vadd.f32 %v1685_v21, %v1683_v8 }
 0xcb5   :  { %v1688_v24 = vpack.c.bf16 %v1687_v22, %v1686_v20 }
 0xcb7   :  { %2717 = vmatmul.mubr.bf16.vlgmr.msra.gmra.mrb[36].mxu1 %v1688_v24 }
 0xcb8   :  { %2756 = vmatprep.mubr.msk.bf16.mxu1 %vm3104_vm0, %v3102_v7  ;;  %2741 = vmatpush3.bf16.msra.mxu1 %v2893_v5 }
 0xcb9   :  { %2742 = vmatprep.subr.bf16.mxu1 %v3102_v7 }
 0xcbc   :  { %2743 = vmatpush3.bf16.msra.mxu1 %v2894_v6 }
 0xcbd   :  { %2744 = vmatprep.subr.bf16.mxu1 %v3102_v7 }
 0xcc0   :  { %2745 = vmatpush3.bf16.msra.mxu1 %v2895_v9 }
 0xcc1   :  { %2746 = vmatprep.subr.bf16.mxu1 %v3102_v7 }
 0xcc4   :  { %2747 = vmatpush3.bf16.msra.mxu1 %v2896_v10 }
 0xcc5   :  { %2748 = vmatprep.subr.bf16.mxu1 %v3102_v7 }
 0xcc8   :  { %2749 = vmatpush3.bf16.msra.mxu1 %v2897_v11 }
 0xcc9   :  { %2750 = vmatprep.subr.bf16.mxu1 %v3102_v7 }
 0xccc   :  { %2751 = vmatpush3.bf16.msra.mxu1 %v2898_v14 }
 0xccd   :  { %2752 = vmatprep.subr.bf16.mxu1 %v3102_v7 }
 0xcd0   :  { %2753 = vmatpush3.bf16.msra.mxu1 %v2899_v15 }
 0xcd1   :  { %2754 = vmatprep.subr.bf16.mxu1 %v3102_v7 }
 0xcd4   :  { %2755 = vmatpush3.bf16.msra.mxu1 %v2900_v17 }
 0xd8a   :  { %v1796_v25 = vpop.f32.mrb[36].mxu1 }
 0xd8b   :  { %v1797_v28 = vadd.f32 %v2413_v12, %v1796_v25  ;;  %v2718_v31 = vpop.f32.mrb[37].mxu1 }
 0xd8c   :  { %v1799_v29 = vpop.f32.mrb[38].mxu1 }
 0xd8d   :  { %v1803_v13 = vadd.f32 %v1797_v28, %v3633_v35  ;;  %v1800_v30 = vadd.f32 %v2413_v12, %v1799_v29  ;;  %v2719_v39 = vpop.f32.mrb[39].mxu1  ;;  %v2888_v35 = vld [vmem:[#allocation5 + $0x58] sm:$0xff]  }
 0xd8e   :  { %2727 = vmatpush3.bf16.msra.mxu0 %v2888_v35 }
 0xd8f   :  { %v1804_v16 = vadd.f32 %v1800_v30, %v3635_v36  ;;  %1809 = vadd.xlane.f32.xlu0 %v1803_v13  ;;  %v1815_v32 = vmul.f32 %v1803_v13, %v1803_v13  ;;  %v2889_v36 = vld [vmem:[#allocation5 + $0x60] sm:$0xff]   ;;  %2728 = vmatprep.subr.bf16.mxu0 %v3102_v7 }
 0xd91   :  { %1811 = vadd.xlane.f32.xlu1 %v1804_v16  ;;  %v1816_v41 = vmul.f32 %v1804_v16, %v1804_v16 }
 0xd92   :  { %2729 = vmatpush3.bf16.msra.mxu0 %v2889_v36 }
 0xd93   :  { %1817 = vadd.xlane.f32.xlu0 %v1815_v32  ;;  %2730 = vmatprep.subr.bf16.mxu0 %v3102_v7 }
 0xd95   :  { %1819 = vadd.xlane.f32.xlu1 %v1816_v41 }
 0xd96   :  { %2731 = vmatpush3.bf16.msra.mxu0 %v2890_v46 }
 0xd97   :  { %2732 = vmatprep.subr.bf16.mxu0 %v3102_v7 }
 0xd9a   :  { %2733 = vmatpush3.bf16.msra.mxu0 %v2891_v23 }
 0xd9b   :  { %2734 = vmatprep.subr.bf16.mxu0 %v3102_v7 }
 0xd9e   :  { %2735 = vmatpush3.bf16.msra.mxu0 %v2892_v27 }
 0xd9f   :  { %2760 = vmatprep.subr.bf16.mxu0 %v3102_v7 }
 0xe1c   :  { %v1810_v37 = vpop.xlane.xlu0 %1809 }
 0xe1d   :  { %v1813_v53 = vmul.f32 0.03125, %v1810_v37  ;;  %v2437_v37 = vld [vmem:[%s3810_s13 + $0x1] ss:$0 sm:$0xff] }
 0xe1e   :  { %v1812_v26 = vpop.xlane.xlu1 %1811 }
 0xe1f   :  { %v1814_v38 = vmul.f32 0.03125, %v1812_v26  ;;  %v1823_v58 = vmul.f32 %v1813_v53, %v1813_v53  ;;  %v1829_v50 = vsub.f32 %v1803_v13, %v1813_v53 }
 0xe20   :  { %v1818_v40 = vpop.xlane.xlu0 %1817 }
 0xe21   :  { %v1821_v44 = vmul.f32 0.03125, %v1818_v40  ;;  %v1824_v45 = vmul.f32 %v1814_v38, %v1814_v38  ;;  %v1830_v54 = vsub.f32 %v1804_v16, %v1814_v38 }
 0xe22   :  { %v1820_v61 = vpop.xlane.xlu1 %1819 }
 0xe23   :  { %v1825_v47 = vsub.f32 %v1821_v44, %v1823_v58  ;;  %v1822_v42 = vmul.f32 0.03125, %v1820_v61 }
 0xe25   :  { %v1827_v4 = vmax.f32 %v1825_v47, 0.0  ;;  %v1826_v56 = vsub.f32 %v1822_v42, %v1824_v45 }
 0xe27   :  { %v1831_v57 = vadd.f32 1e-12, %v1827_v4  ;;  %v1828_v48 = vmax.f32 %v1826_v56, 0.0  ;;  %v2901_v4 = vld [vmem:[%s3813_s16] sm:$0xff]   ;;  %v2902_v56 = vld [vmem:[%s3813_s16 + $0x8] sm:$0xff]  }
 0xe29   :  { %2989 = vrsqrt.f32 %v1831_v57  ;;  %v1832_v49 = vadd.f32 1e-12, %v1828_v48  ;;  %v2903_v57 = vld [vmem:[%s3813_s16 + $0x10] sm:$0xff]   ;;  %v2904_v48 = vld [vmem:[%s3813_s16 + $0x18] sm:$0xff]  }
 0xe2b   :  { %2991 = vrsqrt.f32 %v1832_v49  ;;  %v2905_v49 = vld [vmem:[%s3813_s16 + $0x20] sm:$0xff]  }
 0xe33   :  { %v2990_v51 = vpop.eup %2989 }
 0xe34   :  { %v1835_v62 = vmul.f32 %v2990_v51, %v1829_v50  ;;  %v2906_v50 = vld [vmem:[%s3813_s16 + $0x28] sm:$0xff]   ;;  %v2907_v51 = vld [vmem:[%s3813_s16 + $0x30] sm:$0xff]  }
 0xe35   :  { %v2992_v55 = vpop.eup %2991 }
 0xe36   :  { %v1836_v0 = vmul.f32 %v2992_v55, %v1830_v54  ;;  %v1843_v60 = vmul.f32 %v2424_v52, %v1835_v62 }
 0xe38   :  { %v1844_v59 = vmul.f32 %v2424_v52, %v1836_v0  ;;  %v1851_v63 = vadd.f32 %v2425_v1, %v1843_v60  ;;  %v2908_v52 = vld [vmem:[%s3813_s16 + $0x38] sm:$0xff]  }
 0xe3a   :  { %v3726_v2 = vadd.f32 %v2425_v1, %v1844_v59 }
 0xe3c   :  { %v1853_v3 = vpack.c.bf16 %v3726_v2, %v1851_v63 }
 0xe3e   :  { %2737 = vmatmul.mubr.bf16.vlgmr.msra.gmra.mrb[24].mxu0 %v1853_v3 }
 0xe3f   :  { %2776 = vmatprep.mubr.msk.bf16.mxu0 %vm3104_vm0, %v3102_v7  ;;  %2761 = vmatpush3.bf16.msra.mxu0 %v2901_v4 }
 0xe40   :  { %2762 = vmatprep.subr.bf16.mxu0 %v3102_v7 }
 0xe43   :  { %2763 = vmatpush3.bf16.msra.mxu0 %v2902_v56 }
 0xe44   :  { %2764 = vmatprep.subr.bf16.mxu0 %v3102_v7 }
 0xe47   :  { %2765 = vmatpush3.bf16.msra.mxu0 %v2903_v57 }
 0xe48   :  { %2766 = vmatprep.subr.bf16.mxu0 %v3102_v7 }
 0xe4b   :  { %2767 = vmatpush3.bf16.msra.mxu0 %v2904_v48 }
 0xe4c   :  { %2768 = vmatprep.subr.bf16.mxu0 %v3102_v7 }
 0xe4f   :  { %2769 = vmatpush3.bf16.msra.mxu0 %v2905_v49 }
 0xe50   :  { %2770 = vmatprep.subr.bf16.mxu0 %v3102_v7 }
 0xe53   :  { %2771 = vmatpush3.bf16.msra.mxu0 %v2906_v50 }
 0xe54   :  { %2772 = vmatprep.subr.bf16.mxu0 %v3102_v7 }
 0xe57   :  { %2773 = vmatpush3.bf16.msra.mxu0 %v2907_v51 }
 0xe58   :  { %2774 = vmatprep.subr.bf16.mxu0 %v3102_v7 }
 0xe5b   :  { %2775 = vmatpush3.bf16.msra.mxu0 %v2908_v52 }
 0xf11   :  { %v1961_v19 = vpop.f32.mrb[24].mxu0 }
 0xf12   :  { %v1962_v20 = vadd.f32 %v2427_v18, %v1961_v19  ;;  %v2738_v21 = vpop.f32.mrb[25].mxu0 }
 0xf13   :  { %v1964_v8 = vpop.f32.mrb[26].mxu0 }
 0xf14   :  { %v1970_v22 = vmul.f32 0.044715, %v1962_v20  ;;  %v1965_v24 = vadd.f32 %v2427_v18, %v1964_v8  ;;  %v2739_v12 = vpop.f32.mrb[27].mxu0  ;;  %v1968_v34 = vmul.f32 0.5, %v1962_v20 }
 0xf16   :  { %v1972_v25 = vmul.f32 %v1970_v22, %v1962_v20  ;;  %v1971_v28 = vmul.f32 0.044715, %v1965_v24  ;;  %v1969_v35 = vmul.f32 0.5, %v1965_v24 }
 0xf18   :  { %v1974_v31 = vmul.f32 %v1972_v25, %v1962_v20  ;;  %v1973_v29 = vmul.f32 %v1971_v28, %v1965_v24 }
 0xf1a   :  { %v1976_v13 = vadd.f32 %v1974_v31, %v1962_v20  ;;  %v1975_v30 = vmul.f32 %v1973_v29, %v1965_v24  ;;  %v2448_v20 = vld [vmem:[%s3811_s14 + $0x1] ss:$0 sm:$0xff]  ;;  %s3105_s14 = smov [#allocation8]  }
 0xf1b   :  { %s2276_s1 = sshll.u32 %s3105_s14, 4  ;;  %s2277_s1 = int_to_ptr.vmem [resolvable:$true] %s2276_s1 }
 0xf1c   :  { %v1978_v39 = vmul.f32 0.7978846, %v1976_v13  ;;  %v1977_v16 = vadd.f32 %v1975_v30, %v1965_v24  ;;  %v2449_v24 = vld [vmem:[%s3812_s15 + $0x1] ss:$0 sm:$0xff]  ;;  %v2450_v13 = vld [vmem:[%s3814_s17] ss:$0 sm:$0xff]  ;;  %p3074_p11 = scmp.lt.s32.totalorder %s2277_s1, %s2277_s1 }
 0xf1d   :  { %s3069_s15 = scalar_lea.vmem %s2277_s1, 32 }
 0xf1e   :  { %2993 = vtanh.f32 %v1978_v39  ;;  %v1979_v32 = vmul.f32 0.7978846, %v1977_v16  ;;  %p3070_p10 = scmp.ne.s32.totalorder %s2277_s1, %s3069_s15  ;;  %p3075_p12 = scmp.lt.s32.totalorder %s3069_s15, %s3069_s15 }
 0xf20   :  { %2995 = vtanh.f32 %v1979_v32  ;;  %p3076_p13 = por %p3075_p12, %p3074_p11 }
 0xf22   :  { %p3077_p0 = pnand %p3076_p13, %p3070_p10 }
 0xf28   :  { %v2994_v41 = vpop.eup %2993 }
 0xf29   :  { %v1982_v33 = vadd.f32 1.0, %v2994_v41 }
 0xf2a   :  { %v2996_v43 = vpop.eup %2995 }
 0xf2b   :  { %v1983_v36 = vadd.f32 1.0, %v2996_v43  ;;  %v1984_v46 = vmul.f32 %v1982_v33, %v1968_v34 }
 0xf2d   :  { %v1985_v23 = vmul.f32 %v1983_v36, %v1969_v35 }
 0xf2f   :  { %v1986_v27 = vpack.c.bf16 %v1985_v23, %v1984_v46 }
 0xf31   :  { %2757 = vmatmul.mubr.bf16.vlgmr.msra.gmra.mrb[40].mxu1 %v1986_v27 }
0x1004   :  { %v2094_v53 = vpop.f32.mrb[40].mxu1 }
0x1005   :  { %v2095_v26 = vadd.f32 %v2437_v37, %v2094_v53  ;;  %v2758_v38 = vpop.f32.mrb[41].mxu1 }
0x1006   :  { %v2097_v40 = vpop.f32.mrb[42].mxu1 }
0x1007   :  { %v2101_v58 = vadd.f32 %v2095_v26, %v1851_v63  ;;  %v2098_v44 = vadd.f32 %v2437_v37, %v2097_v40  ;;  %v2759_v61 = vpop.f32.mrb[43].mxu1 }
0x1009   :  { %v2102_v45 = vadd.f32 %v2098_v44, %v3726_v2  ;;  %2107 = vadd.xlane.f32.xlu1 %v2101_v58  ;;  %v2113_v47 = vmul.f32 %v2101_v58, %v2101_v58 }
0x100b   :  { %2109 = vadd.xlane.f32.xlu0 %v2102_v45  ;;  %v2114_v42 = vmul.f32 %v2102_v45, %v2102_v45 }
0x100d   :  { %2115 = vadd.xlane.f32.xlu1 %v2113_v47 }
0x100f   :  { %2117 = vadd.xlane.f32.xlu0 %v2114_v42 }
0x1096   :  { %v2108_v54 = vpop.xlane.xlu1 %2107 }
0x1097   :  { %v2111_v62 = vmul.f32 0.03125, %v2108_v54 }
0x1098   :  { %v2110_v55 = vpop.xlane.xlu0 %2109 }
0x1099   :  { %v2112_v0 = vmul.f32 0.03125, %v2110_v55  ;;  %v2121_v1 = vmul.f32 %v2111_v62, %v2111_v62  ;;  %v2127_v7 = vsub.f32 %v2101_v58, %v2111_v62 }
0x109a   :  { %v2116_v60 = vpop.xlane.xlu1 %2115 }
0x109b   :  { %v2119_v59 = vmul.f32 0.03125, %v2116_v60  ;;  %v2122_v2 = vmul.f32 %v2112_v0, %v2112_v0  ;;  %v2128_v17 = vsub.f32 %v2102_v45, %v2112_v0 }
0x109c   :  { %v2118_v63 = vpop.xlane.xlu0 %2117 }
0x109d   :  { %v2123_v3 = vsub.f32 %v2119_v59, %v2121_v1  ;;  %v2120_v5 = vmul.f32 0.03125, %v2118_v63 }
0x109f   :  { %v2125_v6 = vmax.f32 %v2123_v3, 0.0  ;;  %v2124_v9 = vsub.f32 %v2120_v5, %v2122_v2 }
0x10a1   :  { %v2129_v10 = vadd.f32 1e-12, %v2125_v6  ;;  %v2126_v11 = vmax.f32 %v2124_v9, 0.0 }
0x10a3   :  { %2997 = vrsqrt.f32 %v2129_v10  ;;  %v2130_v14 = vadd.f32 1e-12, %v2126_v11 }
0x10a5   :  { %2999 = vrsqrt.f32 %v2130_v14 }
0x10ad   :  { %v2998_v15 = vpop.eup %2997 }
0x10ae   :  { %v2133_v18 = vmul.f32 %v2998_v15, %v2127_v7 }
0x10af   :  { %v3000_v19 = vpop.eup %2999 }
0x10b0   :  { %v2134_v21 = vmul.f32 %v3000_v19, %v2128_v17  ;;  %v2141_v8 = vmul.f32 %v2448_v20, %v2133_v18 }
0x10b2   :  { %v2142_v22 = vmul.f32 %v2448_v20, %v2134_v21  ;;  %v2149_v25 = vadd.f32 %v2449_v24, %v2141_v8 }
0x10b4   :  { %v2150_v12 = vadd.f32 %v2449_v24, %v2142_v22 }
0x10b6   :  { %v2152_v28 = vrot.slane %v2150_v12, 7 }
0x10b8   :  { %v2155_v31 = vsel %vm2154_vm12, %v2149_v25, %v2152_v28 }
0x10b9   :  { %v2156_v29 = vpack.c.bf16 %v2155_v31, %v2155_v31 }
0x10bb   :  { %2777 = vmatmul.mubr.bf16.vlgmr.msra.gmra.mrb[28].mxu0 %v2156_v29 }
0x118e   :  { %v2262_v30 = vpop.f32.mrb[28].mxu0 }
0x118f   :  { %v2263_v39 = vadd.f32 %v2450_v13, %v2262_v30  ;;  %v2778_v16 = vpop.f32.mrb[29].mxu0 }
0x1190   :  { %v2265_v32 = vpop.f32.mrb[30].mxu0 }
0x1191   :  { %3001 = vtanh.f32 %v2263_v39  ;;  %v2779_v41 = vpop.f32.mrb[31].mxu0 }
0x119b   :  { %v3002_v33 = vpop.eup %3001 }
0x119c   :  { %2269 = vst [vmem:[#allocation8] sm:$0x3] %v3002_v33 }
0x119d   :  { %3080 = shalt.err (!%p3077_p0)
}
0x119e   :  { %s3081_s9 = scalar_lea.hbm %s3815_s18, 32 }
0x119f   :  { %p3082_p1 = scmp.ne.s32.totalorder %s3815_s18, %s3081_s9  ;;  %p3085_p2 = scmp.lt.u32.totalorder %s3081_s9, %s3815_s18 }
0x11a1   :  { %p3087_p3 = pnand %p3085_p2, %p3082_p1 }
0x11a3   :  { %3090 = shalt.err (!%p3087_p3)
}
0x11a4   :  { %2279 = dma.vmem_to_hbm [thread:$0]  %s2277_s1, 32, %s3815_s18, [#allocation4]  }
0x11a5   :  { %3095 = dma.done.wait [#allocation4], 32  }
0x11a6   :  { %3096 = vsyncadd [#allocation4], 4294967264 }
0x11a7   :  { %2283 = vsyncpa [#allocation3], 1 }
0x11a8   :  { %2284 = vsyncpa [#allocation6], 1 }
0x11a9   :  { %2285 = vsyncpa [#allocation4], 1 }

</bundles_post_ra>
